<compile_context>
chip_gen: v5e
topology: v5e:2x2
jax: 0.10.0
libtpu: 0.0.40
codegen_flags: <defaults>
</compile_context>

<pallas_src>
import functools

import jax
import jax.numpy as jnp
from jax import lax
from jax.experimental import pallas as pl
from jax.experimental.pallas import tpu as pltpu


def guide_rnn_kernel(x_ref,        # (T*Bp, X)   time-major, batch-padded input
                     wih_ref,      # (X, 6H)     dense, gate-major cols [r_f|r_b|n_f|n_b|z_f|z_b]
                     bih_ref,      # (1, 6H)
                     whh_ref,      # (2H, 6H)    block-diag, bf16, same column order
                     bhh_ref,      # (1, 6H)
                     whead_ref,    # (2H, ZP)    bf16, cols = [w_loc | w_scale | 0 pad]
                     bhead_ref,    # (1, ZP)     f32,  cols = [b_loc | b_scale | 0 pad]
                     out_ref,      # (Bp, T*ZP)  batch-major output slab
                     gi_scr,       # (T*Bp, 6H)  VMEM scratch: hoisted input projections
                     *, T, Bp, H, Z):
    H2 = 2 * H
    ZP = out_ref.shape[1] // T

    # ---- hoisted input projections: both directions, all gates, one matmul ----
    gi_scr[...] = (jnp.dot(x_ref[...], wih_ref[...],
                           preferred_element_type=jnp.float32) + bih_ref[...])

    # Weights read once outside the serial loop (bf16 -> half the vregs / VMEM
    # traffic; intent is to keep the recurrent RHS stationary across steps).
    whh = whh_ref[...]                                   # (2H, 6H) bf16
    bhh = bhh_ref[...]                                   # (1, 6H)  f32
    w_top = whead_ref[0:H, :]                            # (H, ZP)  bf16 (forward hidden)
    w_bot = whead_ref[H:H2, :]                           # (H, ZP)  bf16 (backward hidden)
    bhead = jnp.broadcast_to(bhead_ref[...], (Bp, ZP))   # hoisted broadcast

    # Hoisted masks (JAX does not CSE broadcast_in_dim inside loops).
    col6 = lax.broadcasted_iota(jnp.int32, (Bp, 6 * H), 1)
    fwd_mask = (col6 % H2) < H                 # forward-direction lanes of each gate pair
    lane = lax.broadcasted_iota(jnp.int32, (Bp, ZP), 1)
    scale_mask = (lane >= Z) & (lane < 2 * Z)  # columns that get exp()

    # ---- fused fwd/bwd recurrence, fully unrolled (T static & small) ----------
    h_cat = jnp.zeros((Bp, H2), jnp.float32)             # [h_f | h_b]
    parts = [None] * T                                   # per-time-block head accumulators

    for t in range(T):
        tb = T - 1 - t
        # single block-diagonal hidden matmul per step: bf16 operands, f32 acc
        gh = jnp.dot(h_cat.astype(jnp.bfloat16), whh,
                     preferred_element_type=jnp.float32) + bhh         # (Bp, 6H)
        # forward gi from time block t, backward gi from time block T-1-t
        gi = jnp.where(fwd_mask,
                       gi_scr[t * Bp:(t + 1) * Bp, :],
                       gi_scr[tb * Bp:(tb + 1) * Bp, :])               # (Bp, 6H)
        # gate-major r|n|z layout; every gate slice starts on a 128-lane boundary
        r = jax.nn.sigmoid(gi[:, 0:H2] + gh[:, 0:H2])
        n = jnp.tanh(gi[:, H2:2 * H2] + r * gh[:, H2:2 * H2])
        z = jax.nn.sigmoid(gi[:, 2 * H2:3 * H2] + gh[:, 2 * H2:3 * H2])
        h_cat = (1.0 - z) * n + z * h_cat

        # fold the Linear heads into the recurrence: tiny matmuls are free
        # filler while the MXU waits on the gate EUP/VPU latency.
        h16 = h_cat.astype(jnp.bfloat16)
        fwd_o = jnp.dot(h16[:, 0:H], w_top, preferred_element_type=jnp.float32)
        bwd_o = jnp.dot(h16[:, H:H2], w_bot, preferred_element_type=jnp.float32)
        parts[t] = fwd_o if parts[t] is None else parts[t] + fwd_o
        parts[tb] = bwd_o if parts[tb] is None else parts[tb] + bwd_o

        # store each output time block as soon as both directions contributed:
        # one unmasked, lane-aligned 128-wide vreg store per block.
        if t >= tb:
            for j in ([t] if t == tb else [tb, t]):
                v = parts[j] + bhead
                out_ref[:, j * ZP:(j + 1) * ZP] = jnp.where(scale_mask, jnp.exp(v), v)
                parts[j] = None


def _gate_cols(wf, wb, H):
    """(R,3H) torch gate order r|z|n per direction -> (R,6H) gate-major r|n|z,
    direction-minor: [r_f|r_b|n_f|n_b|z_f|z_b]."""
    return jnp.concatenate([wf[:, 0:H], wb[:, 0:H],                  # r
                            wf[:, 2 * H:3 * H], wb[:, 2 * H:3 * H],  # n
                            wf[:, H:2 * H], wb[:, H:2 * H]], axis=1)  # z


def _fuse_hidden(wf, wb, H):
    """whh_f/whh_b:(H,3H) -> (2H,6H) block-diag with the _gate_cols column order."""
    zH = jnp.zeros((H, H), jnp.float32)
    top = jnp.concatenate([wf[:, 0:H], zH, wf[:, 2 * H:3 * H], zH, wf[:, H:2 * H], zH], axis=1)
    bot = jnp.concatenate([zH, wb[:, 0:H], zH, wb[:, 2 * H:3 * H], zH, wb[:, H:2 * H]], axis=1)
    return jnp.concatenate([top, bot], axis=0)


def guide_rnn_forward(x, p):
    """x: (B, T, x_dim) float32 -> (loc, scale), each (B, T, z_dim)."""
    B, T, X = x.shape
    H = p["whh_f"].shape[0]
    Z = p["wloc"].shape[1]
    Bp = ((B + 7) // 8) * 8          # pad batch to a sublane multiple of 8
    ZP = 128                         # lane-dense padded head width [loc | scale | 0]

    # Fused weight layouts (gate-major r|n|z, direction-minor inside each gate).
    wih = _gate_cols(p["wih_f"], p["wih_b"], H)                       # (X, 6H)  f32
    bih = _gate_cols(p["bih_f"], p["bih_b"], H)                       # (1, 6H)
    whh = _fuse_hidden(p["whh_f"], p["whh_b"], H).astype(jnp.bfloat16)  # (2H, 6H) bf16
    bhh = _gate_cols(p["bhh_f"], p["bhh_b"], H)                       # (1, 6H)
    whead = jnp.concatenate([p["wloc"], p["wscl"]], axis=1)           # (2H, 2Z)
    whead = jnp.pad(whead, ((0, 0), (0, ZP - 2 * Z))).astype(jnp.bfloat16)  # (2H, ZP)
    bhead = jnp.pad(jnp.concatenate([p["bloc"], p["bscl"]], axis=1),
                    ((0, 0), (0, ZP - 2 * Z)))                        # (1, ZP) f32

    # Time-major, batch-padded input (transpose+pad+reshape fuse into one XLA op;
    # no reversed-copy concat — the kernel reads the mirrored time block instead).
    x_tm = jnp.transpose(x, (1, 0, 2))                                # (T, B, X)
    x_tm = jnp.pad(x_tm, ((0, 0), (0, Bp - B), (0, 0))).reshape(T * Bp, X)

    vmem = pl.BlockSpec(memory_space=pltpu.MemorySpace.VMEM)
    out = pl.pallas_call(
        functools.partial(guide_rnn_kernel, T=T, Bp=Bp, H=H, Z=Z),
        out_shape=jax.ShapeDtypeStruct((Bp, T * ZP), jnp.float32),
        in_specs=[vmem] * 7,
        out_specs=vmem,
        scratch_shapes=[pltpu.VMEM((T * Bp, 6 * H), jnp.float32)],
    )(x_tm, wih, bih, whh, bhh, whead, bhead)

    out = out.reshape(Bp, T, ZP)          # free reshape; no transposes needed
    loc = out[:B, :, 0:Z]
    scale = out[:B, :, Z:2 * Z]
    return loc, scale


def reference(x, p):
    """Pure-JAX reference matching torch.nn.GRU(bidirectional) + Linear heads."""
    B, T, X = x.shape
    H = p["whh_f"].shape[0]

    def run_dir(wih, whh, bih, bhh, xs):
        def step(h, x_t):
            gi = x_t @ wih + bih[0]
            gh = h @ whh + bhh[0]
            r = jax.nn.sigmoid(gi[:, :H] + gh[:, :H])
            z = jax.nn.sigmoid(gi[:, H:2 * H] + gh[:, H:2 * H])
            n = jnp.tanh(gi[:, 2 * H:] + r * gh[:, 2 * H:])
            h = (1.0 - z) * n + z * h
            return h, h
        h0 = jnp.zeros((B, H), jnp.float32)
        _, hs = lax.scan(step, h0, xs)
        return hs

    x_tm = jnp.transpose(x, (1, 0, 2))
    hf = run_dir(p["wih_f"], p["whh_f"], p["bih_f"], p["bhh_f"], x_tm)
    hb = run_dir(p["wih_b"], p["whh_b"], p["bih_b"], p["bhh_b"], x_tm[::-1])[::-1]
    h = jnp.transpose(jnp.concatenate([hf, hb], axis=-1), (1, 0, 2))  # (B, T, 2H)
    loc = h @ p["wloc"] + p["bloc"][0]
    scale = jnp.exp(h @ p["wscl"] + p["bscl"][0])
    return loc, scale


if __name__ == "__main__":
    B, T, X, H, Z = 2, 8, 16, 64, 8   # batch, seq, x_dim, rnn_dim, z_dim

    key = jax.random.PRNGKey(0)
    keys = jax.random.split(key, 13)
    s_gru = 1.0 / float(jnp.sqrt(H))
    s_fc = 1.0 / float(jnp.sqrt(2 * H))

    def u(k, shape, s):
        return jax.random.uniform(k, shape, jnp.float32, -s, s)

    # Weights stored pre-transposed relative to torch: w_ih:(X,3H), w_hh:(H,3H),
    # fc weights:(2H,Z). Gate order along the 3H axis is r|z|n (torch convention).
    params = dict(
        wih_f=u(keys[0], (X, 3 * H), s_gru),
        whh_f=u(keys[1], (H, 3 * H), s_gru),
        bih_f=u(keys[2], (1, 3 * H), s_gru),
        bhh_f=u(keys[3], (1, 3 * H), s_gru),
        wih_b=u(keys[4], (X, 3 * H), s_gru),
        whh_b=u(keys[5], (H, 3 * H), s_gru),
        bih_b=u(keys[6], (1, 3 * H), s_gru),
        bhh_b=u(keys[7], (1, 3 * H), s_gru),
        wloc=u(keys[8], (2 * H, Z), s_fc),
        bloc=u(keys[9], (1, Z), s_fc),
        wscl=u(keys[10], (2 * H, Z), s_fc),
        bscl=u(keys[11], (1, Z), s_fc),
    )
    x = jax.random.normal(keys[12], (B, T, X), jnp.float32)

    loc, scale = guide_rnn_forward(x, params)
    jax.block_until_ready((loc, scale))

    loc_ref, scale_ref = reference(x, params)
    assert loc.shape == (B, T, Z) and scale.shape == (B, T, Z)
    # Tolerance accounts for bf16 MXU operands in the recurrent / head matmuls
    # (f32 accumulation); observed drift over the 8-step recurrence is ~1e-3.
    assert jnp.allclose(loc, loc_ref, atol=2e-2, rtol=2e-2)
    assert jnp.allclose(scale, scale_ref, atol=2e-2, rtol=2e-2)

    print("KERNEL_OK")
</pallas_src>

<mosaic_0001>
module attributes {stable_mosaic.version = 11 : i64} {
  func.func @guide_rnn_kernel(%arg0: memref<64x16xf32, #tpu.memory_space<vmem>>, %arg1: memref<16x384xf32, #tpu.memory_space<vmem>>, %arg2: memref<1x384xf32, #tpu.memory_space<vmem>>, %arg3: memref<128x384xbf16, #tpu.memory_space<vmem>>, %arg4: memref<1x384xf32, #tpu.memory_space<vmem>>, %arg5: memref<128x128xbf16, #tpu.memory_space<vmem>>, %arg6: memref<1x128xf32, #tpu.memory_space<vmem>>, %arg7: memref<8x1024xf32, #tpu.memory_space<vmem>>, %arg8: memref<64x384xf32, #tpu.memory_space<vmem>>) attributes {dimension_semantics = [], scalar_prefetch = 0 : i64, scratch_operands = 1 : i64, tpu.core_type = #tpu.core_type<tc>} {
    %c0 = arith.constant 0 : index
    %c0_0 = arith.constant 0 : index
    %0 = vector.load %arg0[%c0, %c0_0] : memref<64x16xf32, #tpu.memory_space<vmem>>, vector<64x16xf32>
    %c0_1 = arith.constant 0 : index
    %c0_2 = arith.constant 0 : index
    %1 = vector.load %arg1[%c0_1, %c0_2] : memref<16x384xf32, #tpu.memory_space<vmem>>, vector<16x384xf32>
    %cst = arith.constant dense<0.000000e+00> : vector<64x384xf32>
    %2 = tpu.matmul %0, %1, %cst {dimension_numbers = #tpu.dot_dimension_numbers<[1], [0], [0], [1], [0, 0, 1, 1], [], []>} : vector<64x16xf32>, vector<16x384xf32>, vector<64x384xf32> -> vector<64x384xf32>
    %c0_3 = arith.constant 0 : index
    %c0_4 = arith.constant 0 : index
    %3 = vector.load %arg2[%c0_3, %c0_4] : memref<1x384xf32, #tpu.memory_space<vmem>>, vector<1x384xf32>
    %4 = vector.broadcast %3 : vector<1x384xf32> to vector<64x384xf32>
    %5 = arith.addf %2, %4 : vector<64x384xf32>
    %c0_5 = arith.constant 0 : index
    %c0_6 = arith.constant 0 : index
    %6 = vector.load %arg8[%c0_5, %c0_6] : memref<64x384xf32, #tpu.memory_space<vmem>>, vector<64x384xf32>
    tpu.vector_store %arg8[%c0_5, %c0_6], %5 {strides = array<i32>} : memref<64x384xf32, #tpu.memory_space<vmem>>, vector<64x384xf32>,
    %c0_7 = arith.constant 0 : index
    %c0_8 = arith.constant 0 : index
    %7 = vector.load %arg3[%c0_7, %c0_8] : memref<128x384xbf16, #tpu.memory_space<vmem>>, vector<128x384xbf16>
    %c0_9 = arith.constant 0 : index
    %c0_10 = arith.constant 0 : index
    %8 = vector.load %arg4[%c0_9, %c0_10] : memref<1x384xf32, #tpu.memory_space<vmem>>, vector<1x384xf32>
    %c0_11 = arith.constant 0 : index
    %c0_12 = arith.constant 0 : index
    %9 = vector.load %arg5[%c0_11, %c0_12] : memref<128x128xbf16, #tpu.memory_space<vmem>>, vector<64x128xbf16>
    %c64 = arith.constant 64 : index
    %c0_13 = arith.constant 0 : index
    %10 = vector.load %arg5[%c64, %c0_13] : memref<128x128xbf16, #tpu.memory_space<vmem>>, vector<64x128xbf16>
    %c0_14 = arith.constant 0 : index
    %c0_15 = arith.constant 0 : index
    %11 = vector.load %arg6[%c0_14, %c0_15] : memref<1x128xf32, #tpu.memory_space<vmem>>, vector<1x128xf32>
    %12 = vector.shape_cast %11 : vector<1x128xf32> to vector<1x128xf32>
    %13 = vector.broadcast %12 : vector<1x128xf32> to vector<8x128xf32>
    %14 = tpu.iota {dimensions = array<i32: 1>} : vector<8x384xi32>
    %c128_i32 = arith.constant 128 : i32
    %c0_i32 = arith.constant 0 : i32
    %15 = arith.cmpi eq, %c128_i32, %c0_i32 : i32
    %c1_i32 = arith.constant 1 : i32
    %16 = arith.select %15, %c1_i32, %c128_i32 : i32
    %17 = vector.broadcast %16 : i32 to vector<8x384xi32>
    %18 = arith.remsi %14, %17 : vector<8x384xi32>
    %c0_i32_16 = arith.constant 0 : i32
    %19 = vector.broadcast %c0_i32_16 : i32 to vector<8x384xi32>
    %20 = arith.cmpi ne, %18, %19 : vector<8x384xi32>
    %c0_i32_17 = arith.constant 0 : i32
    %21 = vector.broadcast %c0_i32_17 : i32 to vector<8x384xi32>
    %22 = arith.cmpi slt, %18, %21 : vector<8x384xi32>
    %c0_i32_18 = arith.constant 0 : i32
    %23 = arith.cmpi slt, %16, %c0_i32_18 : i32
    %24 = vector.broadcast %23 : i1 to vector<8x384xi1>
    %25 = vector.broadcast %24 : vector<8x384xi1> to vector<8x384xi1>
    %26 = arith.xori %22, %25 : vector<8x384xi1>
    %27 = arith.andi %26, %20 : vector<8x384xi1>
    %28 = vector.broadcast %16 : i32 to vector<8x384xi32>
    %29 = arith.addi %18, %28 : vector<8x384xi32>
    %30 = arith.select %27, %29, %18 : vector<8x384xi1>, vector<8x384xi32>
    %c64_i32 = arith.constant 64 : i32
    %31 = vector.broadcast %c64_i32 : i32 to vector<8x384xi32>
    %32 = arith.cmpi slt, %30, %31 : vector<8x384xi32>
    %33 = tpu.iota {dimensions = array<i32: 1>} : vector<8x128xi32>
    %c8_i32 = arith.constant 8 : i32
    %34 = vector.broadcast %c8_i32 : i32 to vector<8x128xi32>
    %35 = arith.cmpi sge, %33, %34 : vector<8x128xi32>
    %c16_i32 = arith.constant 16 : i32
    %36 = vector.broadcast %c16_i32 : i32 to vector<8x128xi32>
    %37 = arith.cmpi slt, %33, %36 : vector<8x128xi32>
    %38 = arith.andi %35, %37 : vector<8x128xi1>
    %cst_19 = arith.constant 0.000000e+00 : f32
    %39 = vector.broadcast %cst_19 : f32 to vector<8x128xf32>
    %40 = arith.truncf %39 : vector<8x128xf32> to vector<8x128xbf16>
    %cst_20 = arith.constant dense<0.000000e+00> : vector<8x384xf32>
    %41 = tpu.matmul %40, %7, %cst_20 {dimension_numbers = #tpu.dot_dimension_numbers<[1], [0], [0], [1], [0, 0, 1, 1], [], []>} : vector<8x128xbf16>, vector<128x384xbf16>, vector<8x384xf32> -> vector<8x384xf32>
    %42 = vector.broadcast %8 : vector<1x384xf32> to vector<8x384xf32>
    %43 = arith.addf %41, %42 : vector<8x384xf32>
    %c0_21 = arith.constant 0 : index
    %c0_22 = arith.constant 0 : index
    %44 = vector.load %arg8[%c0_21, %c0_22] : memref<64x384xf32, #tpu.memory_space<vmem>>, vector<8x384xf32>
    %c56 = arith.constant 56 : index
    %c0_23 = arith.constant 0 : index
    %45 = vector.load %arg8[%c56, %c0_23] : memref<64x384xf32, #tpu.memory_space<vmem>>, vector<8x384xf32>
    %46 = arith.select %32, %44, %45 : vector<8x384xi1>, vector<8x384xf32>
    %47 = vector.extract_strided_slice %46 {offsets = [0, 0], sizes = [8, 128], strides = [1, 1]} : vector<8x384xf32> to vector<8x128xf32>
    %48 = vector.extract_strided_slice %43 {offsets = [0, 0], sizes = [8, 128], strides = [1, 1]} : vector<8x384xf32> to vector<8x128xf32>
    %49 = arith.addf %47, %48 : vector<8x128xf32>
    %50 = arith.negf %49 : vector<8x128xf32>
    %51 = math.exp %50 : vector<8x128xf32>
    %cst_24 = arith.constant 1.000000e+00 : f32
    %52 = vector.broadcast %cst_24 : f32 to vector<8x128xf32>
    %53 = arith.addf %52, %51 : vector<8x128xf32>
    %54 = arith.divf %52, %53 : vector<8x128xf32>
    %55 = vector.extract_strided_slice %46 {offsets = [0, 128], sizes = [8, 128], strides = [1, 1]} : vector<8x384xf32> to vector<8x128xf32>
    %56 = vector.extract_strided_slice %43 {offsets = [0, 128], sizes = [8, 128], strides = [1, 1]} : vector<8x384xf32> to vector<8x128xf32>
    %57 = arith.mulf %54, %56 : vector<8x128xf32>
    %58 = arith.addf %55, %57 : vector<8x128xf32>
    %59 = math.tanh %58 : vector<8x128xf32>
    %60 = vector.extract_strided_slice %46 {offsets = [0, 256], sizes = [8, 128], strides = [1, 1]} : vector<8x384xf32> to vector<8x128xf32>
    %61 = vector.extract_strided_slice %43 {offsets = [0, 256], sizes = [8, 128], strides = [1, 1]} : vector<8x384xf32> to vector<8x128xf32>
    %62 = arith.addf %60, %61 : vector<8x128xf32>
    %63 = arith.negf %62 : vector<8x128xf32>
    %64 = math.exp %63 : vector<8x128xf32>
    %cst_25 = arith.constant 1.000000e+00 : f32
    %65 = vector.broadcast %cst_25 : f32 to vector<8x128xf32>
    %66 = arith.addf %65, %64 : vector<8x128xf32>
    %67 = arith.divf %65, %66 : vector<8x128xf32>
    %cst_26 = arith.constant 1.000000e+00 : f32
    %68 = vector.broadcast %cst_26 : f32 to vector<8x128xf32>
    %69 = arith.subf %68, %67 : vector<8x128xf32>
    %70 = arith.mulf %69, %59 : vector<8x128xf32>
    %71 = arith.mulf %67, %39 : vector<8x128xf32>
    %72 = arith.addf %70, %71 : vector<8x128xf32>
    %73 = arith.truncf %72 : vector<8x128xf32> to vector<8x128xbf16>
    %74 = vector.extract_strided_slice %73 {offsets = [0, 0], sizes = [8, 64], strides = [1, 1]} : vector<8x128xbf16> to vector<8x64xbf16>
    %cst_27 = arith.constant dense<0.000000e+00> : vector<8x128xf32>
    %75 = tpu.matmul %74, %9, %cst_27 {dimension_numbers = #tpu.dot_dimension_numbers<[1], [0], [0], [1], [0, 0, 1, 1], [], []>} : vector<8x64xbf16>, vector<64x128xbf16>, vector<8x128xf32> -> vector<8x128xf32>
    %76 = vector.extract_strided_slice %73 {offsets = [0, 64], sizes = [8, 64], strides = [1, 1]} : vector<8x128xbf16> to vector<8x64xbf16>
    %cst_28 = arith.constant dense<0.000000e+00> : vector<8x128xf32>
    %77 = tpu.matmul %76, %10, %cst_28 {dimension_numbers = #tpu.dot_dimension_numbers<[1], [0], [0], [1], [0, 0, 1, 1], [], []>} : vector<8x64xbf16>, vector<64x128xbf16>, vector<8x128xf32> -> vector<8x128xf32>
    %78 = arith.truncf %72 : vector<8x128xf32> to vector<8x128xbf16>
    %cst_29 = arith.constant dense<0.000000e+00> : vector<8x384xf32>
    %79 = tpu.matmul %78, %7, %cst_29 {dimension_numbers = #tpu.dot_dimension_numbers<[1], [0], [0], [1], [0, 0, 1, 1], [], []>} : vector<8x128xbf16>, vector<128x384xbf16>, vector<8x384xf32> -> vector<8x384xf32>
    %80 = vector.broadcast %8 : vector<1x384xf32> to vector<8x384xf32>
    %81 = arith.addf %79, %80 : vector<8x384xf32>
    %c8 = arith.constant 8 : index
    %c0_30 = arith.constant 0 : index
    %82 = vector.load %arg8[%c8, %c0_30] : memref<64x384xf32, #tpu.memory_space<vmem>>, vector<8x384xf32>
    %c48 = arith.constant 48 : index
    %c0_31 = arith.constant 0 : index
    %83 = vector.load %arg8[%c48, %c0_31] : memref<64x384xf32, #tpu.memory_space<vmem>>, vector<8x384xf32>
    %84 = arith.select %32, %82, %83 : vector<8x384xi1>, vector<8x384xf32>
    %85 = vector.extract_strided_slice %84 {offsets = [0, 0], sizes = [8, 128], strides = [1, 1]} : vector<8x384xf32> to vector<8x128xf32>
    %86 = vector.extract_strided_slice %81 {offsets = [0, 0], sizes = [8, 128], strides = [1, 1]} : vector<8x384xf32> to vector<8x128xf32>
    %87 = arith.addf %85, %86 : vector<8x128xf32>
    %88 = arith.negf %87 : vector<8x128xf32>
    %89 = math.exp %88 : vector<8x128xf32>
    %cst_32 = arith.constant 1.000000e+00 : f32
    %90 = vector.broadcast %cst_32 : f32 to vector<8x128xf32>
    %91 = arith.addf %90, %89 : vector<8x128xf32>
    %92 = arith.divf %90, %91 : vector<8x128xf32>
    %93 = vector.extract_strided_slice %84 {offsets = [0, 128], sizes = [8, 128], strides = [1, 1]} : vector<8x384xf32> to vector<8x128xf32>
    %94 = vector.extract_strided_slice %81 {offsets = [0, 128], sizes = [8, 128], strides = [1, 1]} : vector<8x384xf32> to vector<8x128xf32>
    %95 = arith.mulf %92, %94 : vector<8x128xf32>
    %96 = arith.addf %93, %95 : vector<8x128xf32>
    %97 = math.tanh %96 : vector<8x128xf32>
    %98 = vector.extract_strided_slice %84 {offsets = [0, 256], sizes = [8, 128], strides = [1, 1]} : vector<8x384xf32> to vector<8x128xf32>
    %99 = vector.extract_strided_slice %81 {offsets = [0, 256], sizes = [8, 128], strides = [1, 1]} : vector<8x384xf32> to vector<8x128xf32>
    %100 = arith.addf %98, %99 : vector<8x128xf32>
    %101 = arith.negf %100 : vector<8x128xf32>
    %102 = math.exp %101 : vector<8x128xf32>
    %cst_33 = arith.constant 1.000000e+00 : f32
    %103 = vector.broadcast %cst_33 : f32 to vector<8x128xf32>
    %104 = arith.addf %103, %102 : vector<8x128xf32>
    %105 = arith.divf %103, %104 : vector<8x128xf32>
    %cst_34 = arith.constant 1.000000e+00 : f32
    %106 = vector.broadcast %cst_34 : f32 to vector<8x128xf32>
    %107 = arith.subf %106, %105 : vector<8x128xf32>
    %108 = arith.mulf %107, %97 : vector<8x128xf32>
    %109 = arith.mulf %105, %72 : vector<8x128xf32>
    %110 = arith.addf %108, %109 : vector<8x128xf32>
    %111 = arith.truncf %110 : vector<8x128xf32> to vector<8x128xbf16>
    %112 = vector.extract_strided_slice %111 {offsets = [0, 0], sizes = [8, 64], strides = [1, 1]} : vector<8x128xbf16> to vector<8x64xbf16>
    %cst_35 = arith.constant dense<0.000000e+00> : vector<8x128xf32>
    %113 = tpu.matmul %112, %9, %cst_35 {dimension_numbers = #tpu.dot_dimension_numbers<[1], [0], [0], [1], [0, 0, 1, 1], [], []>} : vector<8x64xbf16>, vector<64x128xbf16>, vector<8x128xf32> -> vector<8x128xf32>
    %114 = vector.extract_strided_slice %111 {offsets = [0, 64], sizes = [8, 64], strides = [1, 1]} : vector<8x128xbf16> to vector<8x64xbf16>
    %cst_36 = arith.constant dense<0.000000e+00> : vector<8x128xf32>
    %115 = tpu.matmul %114, %10, %cst_36 {dimension_numbers = #tpu.dot_dimension_numbers<[1], [0], [0], [1], [0, 0, 1, 1], [], []>} : vector<8x64xbf16>, vector<64x128xbf16>, vector<8x128xf32> -> vector<8x128xf32>
    %116 = arith.truncf %110 : vector<8x128xf32> to vector<8x128xbf16>
    %cst_37 = arith.constant dense<0.000000e+00> : vector<8x384xf32>
    %117 = tpu.matmul %116, %7, %cst_37 {dimension_numbers = #tpu.dot_dimension_numbers<[1], [0], [0], [1], [0, 0, 1, 1], [], []>} : vector<8x128xbf16>, vector<128x384xbf16>, vector<8x384xf32> -> vector<8x384xf32>
    %118 = vector.broadcast %8 : vector<1x384xf32> to vector<8x384xf32>
    %119 = arith.addf %117, %118 : vector<8x384xf32>
    %c16 = arith.constant 16 : index
    %c0_38 = arith.constant 0 : index
    %120 = vector.load %arg8[%c16, %c0_38] : memref<64x384xf32, #tpu.memory_space<vmem>>, vector<8x384xf32>
    %c40 = arith.constant 40 : index
    %c0_39 = arith.constant 0 : index
    %121 = vector.load %arg8[%c40, %c0_39] : memref<64x384xf32, #tpu.memory_space<vmem>>, vector<8x384xf32>
    %122 = arith.select %32, %120, %121 : vector<8x384xi1>, vector<8x384xf32>
    %123 = vector.extract_strided_slice %122 {offsets = [0, 0], sizes = [8, 128], strides = [1, 1]} : vector<8x384xf32> to vector<8x128xf32>
    %124 = vector.extract_strided_slice %119 {offsets = [0, 0], sizes = [8, 128], strides = [1, 1]} : vector<8x384xf32> to vector<8x128xf32>
    %125 = arith.addf %123, %124 : vector<8x128xf32>
    %126 = arith.negf %125 : vector<8x128xf32>
    %127 = math.exp %126 : vector<8x128xf32>
    %cst_40 = arith.constant 1.000000e+00 : f32
    %128 = vector.broadcast %cst_40 : f32 to vector<8x128xf32>
    %129 = arith.addf %128, %127 : vector<8x128xf32>
    %130 = arith.divf %128, %129 : vector<8x128xf32>
    %131 = vector.extract_strided_slice %122 {offsets = [0, 128], sizes = [8, 128], strides = [1, 1]} : vector<8x384xf32> to vector<8x128xf32>
    %132 = vector.extract_strided_slice %119 {offsets = [0, 128], sizes = [8, 128], strides = [1, 1]} : vector<8x384xf32> to vector<8x128xf32>
    %133 = arith.mulf %130, %132 : vector<8x128xf32>
    %134 = arith.addf %131, %133 : vector<8x128xf32>
    %135 = math.tanh %134 : vector<8x128xf32>
    %136 = vector.extract_strided_slice %122 {offsets = [0, 256], sizes = [8, 128], strides = [1, 1]} : vector<8x384xf32> to vector<8x128xf32>
    %137 = vector.extract_strided_slice %119 {offsets = [0, 256], sizes = [8, 128], strides = [1, 1]} : vector<8x384xf32> to vector<8x128xf32>
    %138 = arith.addf %136, %137 : vector<8x128xf32>
    %139 = arith.negf %138 : vector<8x128xf32>
    %140 = math.exp %139 : vector<8x128xf32>
    %cst_41 = arith.constant 1.000000e+00 : f32
    %141 = vector.broadcast %cst_41 : f32 to vector<8x128xf32>
    %142 = arith.addf %141, %140 : vector<8x128xf32>
    %143 = arith.divf %141, %142 : vector<8x128xf32>
    %cst_42 = arith.constant 1.000000e+00 : f32
    %144 = vector.broadcast %cst_42 : f32 to vector<8x128xf32>
    %145 = arith.subf %144, %143 : vector<8x128xf32>
    %146 = arith.mulf %145, %135 : vector<8x128xf32>
    %147 = arith.mulf %143, %110 : vector<8x128xf32>
    %148 = arith.addf %146, %147 : vector<8x128xf32>
    %149 = arith.truncf %148 : vector<8x128xf32> to vector<8x128xbf16>
    %150 = vector.extract_strided_slice %149 {offsets = [0, 0], sizes = [8, 64], strides = [1, 1]} : vector<8x128xbf16> to vector<8x64xbf16>
    %cst_43 = arith.constant dense<0.000000e+00> : vector<8x128xf32>
    %151 = tpu.matmul %150, %9, %cst_43 {dimension_numbers = #tpu.dot_dimension_numbers<[1], [0], [0], [1], [0, 0, 1, 1], [], []>} : vector<8x64xbf16>, vector<64x128xbf16>, vector<8x128xf32> -> vector<8x128xf32>
    %152 = vector.extract_strided_slice %149 {offsets = [0, 64], sizes = [8, 64], strides = [1, 1]} : vector<8x128xbf16> to vector<8x64xbf16>
    %cst_44 = arith.constant dense<0.000000e+00> : vector<8x128xf32>
    %153 = tpu.matmul %152, %10, %cst_44 {dimension_numbers = #tpu.dot_dimension_numbers<[1], [0], [0], [1], [0, 0, 1, 1], [], []>} : vector<8x64xbf16>, vector<64x128xbf16>, vector<8x128xf32> -> vector<8x128xf32>
    %154 = arith.truncf %148 : vector<8x128xf32> to vector<8x128xbf16>
    %cst_45 = arith.constant dense<0.000000e+00> : vector<8x384xf32>
    %155 = tpu.matmul %154, %7, %cst_45 {dimension_numbers = #tpu.dot_dimension_numbers<[1], [0], [0], [1], [0, 0, 1, 1], [], []>} : vector<8x128xbf16>, vector<128x384xbf16>, vector<8x384xf32> -> vector<8x384xf32>
    %156 = vector.broadcast %8 : vector<1x384xf32> to vector<8x384xf32>
    %157 = arith.addf %155, %156 : vector<8x384xf32>
    %c24 = arith.constant 24 : index
    %c0_46 = arith.constant 0 : index
    %158 = vector.load %arg8[%c24, %c0_46] : memref<64x384xf32, #tpu.memory_space<vmem>>, vector<8x384xf32>
    %c32 = arith.constant 32 : index
    %c0_47 = arith.constant 0 : index
    %159 = vector.load %arg8[%c32, %c0_47] : memref<64x384xf32, #tpu.memory_space<vmem>>, vector<8x384xf32>
    %160 = arith.select %32, %158, %159 : vector<8x384xi1>, vector<8x384xf32>
    %161 = vector.extract_strided_slice %160 {offsets = [0, 0], sizes = [8, 128], strides = [1, 1]} : vector<8x384xf32> to vector<8x128xf32>
    %162 = vector.extract_strided_slice %157 {offsets = [0, 0], sizes = [8, 128], strides = [1, 1]} : vector<8x384xf32> to vector<8x128xf32>
    %163 = arith.addf %161, %162 : vector<8x128xf32>
    %164 = arith.negf %163 : vector<8x128xf32>
    %165 = math.exp %164 : vector<8x128xf32>
    %cst_48 = arith.constant 1.000000e+00 : f32
    %166 = vector.broadcast %cst_48 : f32 to vector<8x128xf32>
    %167 = arith.addf %166, %165 : vector<8x128xf32>
    %168 = arith.divf %166, %167 : vector<8x128xf32>
    %169 = vector.extract_strided_slice %160 {offsets = [0, 128], sizes = [8, 128], strides = [1, 1]} : vector<8x384xf32> to vector<8x128xf32>
    %170 = vector.extract_strided_slice %157 {offsets = [0, 128], sizes = [8, 128], strides = [1, 1]} : vector<8x384xf32> to vector<8x128xf32>
    %171 = arith.mulf %168, %170 : vector<8x128xf32>
    %172 = arith.addf %169, %171 : vector<8x128xf32>
    %173 = math.tanh %172 : vector<8x128xf32>
    %174 = vector.extract_strided_slice %160 {offsets = [0, 256], sizes = [8, 128], strides = [1, 1]} : vector<8x384xf32> to vector<8x128xf32>
    %175 = vector.extract_strided_slice %157 {offsets = [0, 256], sizes = [8, 128], strides = [1, 1]} : vector<8x384xf32> to vector<8x128xf32>
    %176 = arith.addf %174, %175 : vector<8x128xf32>
    %177 = arith.negf %176 : vector<8x128xf32>
    %178 = math.exp %177 : vector<8x128xf32>
    %cst_49 = arith.constant 1.000000e+00 : f32
    %179 = vector.broadcast %cst_49 : f32 to vector<8x128xf32>
    %180 = arith.addf %179, %178 : vector<8x128xf32>
    %181 = arith.divf %179, %180 : vector<8x128xf32>
    %cst_50 = arith.constant 1.000000e+00 : f32
    %182 = vector.broadcast %cst_50 : f32 to vector<8x128xf32>
    %183 = arith.subf %182, %181 : vector<8x128xf32>
    %184 = arith.mulf %183, %173 : vector<8x128xf32>
    %185 = arith.mulf %181, %148 : vector<8x128xf32>
    %186 = arith.addf %184, %185 : vector<8x128xf32>
    %187 = arith.truncf %186 : vector<8x128xf32> to vector<8x128xbf16>
    %188 = vector.extract_strided_slice %187 {offsets = [0, 0], sizes = [8, 64], strides = [1, 1]} : vector<8x128xbf16> to vector<8x64xbf16>
    %cst_51 = arith.constant dense<0.000000e+00> : vector<8x128xf32>
    %189 = tpu.matmul %188, %9, %cst_51 {dimension_numbers = #tpu.dot_dimension_numbers<[1], [0], [0], [1], [0, 0, 1, 1], [], []>} : vector<8x64xbf16>, vector<64x128xbf16>, vector<8x128xf32> -> vector<8x128xf32>
    %190 = vector.extract_strided_slice %187 {offsets = [0, 64], sizes = [8, 64], strides = [1, 1]} : vector<8x128xbf16> to vector<8x64xbf16>
    %cst_52 = arith.constant dense<0.000000e+00> : vector<8x128xf32>
    %191 = tpu.matmul %190, %10, %cst_52 {dimension_numbers = #tpu.dot_dimension_numbers<[1], [0], [0], [1], [0, 0, 1, 1], [], []>} : vector<8x64xbf16>, vector<64x128xbf16>, vector<8x128xf32> -> vector<8x128xf32>
    %192 = arith.truncf %186 : vector<8x128xf32> to vector<8x128xbf16>
    %cst_53 = arith.constant dense<0.000000e+00> : vector<8x384xf32>
    %193 = tpu.matmul %192, %7, %cst_53 {dimension_numbers = #tpu.dot_dimension_numbers<[1], [0], [0], [1], [0, 0, 1, 1], [], []>} : vector<8x128xbf16>, vector<128x384xbf16>, vector<8x384xf32> -> vector<8x384xf32>
    %194 = vector.broadcast %8 : vector<1x384xf32> to vector<8x384xf32>
    %195 = arith.addf %193, %194 : vector<8x384xf32>
    %c32_54 = arith.constant 32 : index
    %c0_55 = arith.constant 0 : index
    %196 = vector.load %arg8[%c32_54, %c0_55] : memref<64x384xf32, #tpu.memory_space<vmem>>, vector<8x384xf32>
    %c24_56 = arith.constant 24 : index
    %c0_57 = arith.constant 0 : index
    %197 = vector.load %arg8[%c24_56, %c0_57] : memref<64x384xf32, #tpu.memory_space<vmem>>, vector<8x384xf32>
    %198 = arith.select %32, %196, %197 : vector<8x384xi1>, vector<8x384xf32>
    %199 = vector.extract_strided_slice %198 {offsets = [0, 0], sizes = [8, 128], strides = [1, 1]} : vector<8x384xf32> to vector<8x128xf32>
    %200 = vector.extract_strided_slice %195 {offsets = [0, 0], sizes = [8, 128], strides = [1, 1]} : vector<8x384xf32> to vector<8x128xf32>
    %201 = arith.addf %199, %200 : vector<8x128xf32>
    %202 = arith.negf %201 : vector<8x128xf32>
    %203 = math.exp %202 : vector<8x128xf32>
    %cst_58 = arith.constant 1.000000e+00 : f32
    %204 = vector.broadcast %cst_58 : f32 to vector<8x128xf32>
    %205 = arith.addf %204, %203 : vector<8x128xf32>
    %206 = arith.divf %204, %205 : vector<8x128xf32>
    %207 = vector.extract_strided_slice %198 {offsets = [0, 128], sizes = [8, 128], strides = [1, 1]} : vector<8x384xf32> to vector<8x128xf32>
    %208 = vector.extract_strided_slice %195 {offsets = [0, 128], sizes = [8, 128], strides = [1, 1]} : vector<8x384xf32> to vector<8x128xf32>
    %209 = arith.mulf %206, %208 : vector<8x128xf32>
    %210 = arith.addf %207, %209 : vector<8x128xf32>
    %211 = math.tanh %210 : vector<8x128xf32>
    %212 = vector.extract_strided_slice %198 {offsets = [0, 256], sizes = [8, 128], strides = [1, 1]} : vector<8x384xf32> to vector<8x128xf32>
    %213 = vector.extract_strided_slice %195 {offsets = [0, 256], sizes = [8, 128], strides = [1, 1]} : vector<8x384xf32> to vector<8x128xf32>
    %214 = arith.addf %212, %213 : vector<8x128xf32>
    %215 = arith.negf %214 : vector<8x128xf32>
    %216 = math.exp %215 : vector<8x128xf32>
    %cst_59 = arith.constant 1.000000e+00 : f32
    %217 = vector.broadcast %cst_59 : f32 to vector<8x128xf32>
    %218 = arith.addf %217, %216 : vector<8x128xf32>
    %219 = arith.divf %217, %218 : vector<8x128xf32>
    %cst_60 = arith.constant 1.000000e+00 : f32
    %220 = vector.broadcast %cst_60 : f32 to vector<8x128xf32>
    %221 = arith.subf %220, %219 : vector<8x128xf32>
    %222 = arith.mulf %221, %211 : vector<8x128xf32>
    %223 = arith.mulf %219, %186 : vector<8x128xf32>
    %224 = arith.addf %222, %223 : vector<8x128xf32>
    %225 = arith.truncf %224 : vector<8x128xf32> to vector<8x128xbf16>
    %226 = vector.extract_strided_slice %225 {offsets = [0, 0], sizes = [8, 64], strides = [1, 1]} : vector<8x128xbf16> to vector<8x64xbf16>
    %cst_61 = arith.constant dense<0.000000e+00> : vector<8x128xf32>
    %227 = tpu.matmul %226, %9, %cst_61 {dimension_numbers = #tpu.dot_dimension_numbers<[1], [0], [0], [1], [0, 0, 1, 1], [], []>} : vector<8x64xbf16>, vector<64x128xbf16>, vector<8x128xf32> -> vector<8x128xf32>
    %228 = vector.extract_strided_slice %225 {offsets = [0, 64], sizes = [8, 64], strides = [1, 1]} : vector<8x128xbf16> to vector<8x64xbf16>
    %cst_62 = arith.constant dense<0.000000e+00> : vector<8x128xf32>
    %229 = tpu.matmul %228, %10, %cst_62 {dimension_numbers = #tpu.dot_dimension_numbers<[1], [0], [0], [1], [0, 0, 1, 1], [], []>} : vector<8x64xbf16>, vector<64x128xbf16>, vector<8x128xf32> -> vector<8x128xf32>
    %230 = arith.addf %191, %227 : vector<8x128xf32>
    %231 = arith.addf %189, %229 : vector<8x128xf32>
    %232 = arith.addf %231, %13 : vector<8x128xf32>
    %233 = math.exp %232 : vector<8x128xf32>
    %234 = arith.select %38, %233, %232 : vector<8x128xi1>, vector<8x128xf32>
    %c0_63 = arith.constant 0 : index
    %c384 = arith.constant 384 : index
    %235 = vector.load %arg7[%c0_63, %c384] : memref<8x1024xf32, #tpu.memory_space<vmem>>, vector<8x128xf32>
    tpu.vector_store %arg7[%c0_63, %c384], %234 {strides = array<i32>} : memref<8x1024xf32, #tpu.memory_space<vmem>>, vector<8x128xf32>,
    %236 = arith.addf %230, %13 : vector<8x128xf32>
    %237 = math.exp %236 : vector<8x128xf32>
    %238 = arith.select %38, %237, %236 : vector<8x128xi1>, vector<8x128xf32>
    %c0_64 = arith.constant 0 : index
    %c512 = arith.constant 512 : index
    %239 = vector.load %arg7[%c0_64, %c512] : memref<8x1024xf32, #tpu.memory_space<vmem>>, vector<8x128xf32>
    tpu.vector_store %arg7[%c0_64, %c512], %238 {strides = array<i32>} : memref<8x1024xf32, #tpu.memory_space<vmem>>, vector<8x128xf32>,
    %240 = arith.truncf %224 : vector<8x128xf32> to vector<8x128xbf16>
    %cst_65 = arith.constant dense<0.000000e+00> : vector<8x384xf32>
    %241 = tpu.matmul %240, %7, %cst_65 {dimension_numbers = #tpu.dot_dimension_numbers<[1], [0], [0], [1], [0, 0, 1, 1], [], []>} : vector<8x128xbf16>, vector<128x384xbf16>, vector<8x384xf32> -> vector<8x384xf32>
    %242 = vector.broadcast %8 : vector<1x384xf32> to vector<8x384xf32>
    %243 = arith.addf %241, %242 : vector<8x384xf32>
    %c40_66 = arith.constant 40 : index
    %c0_67 = arith.constant 0 : index
    %244 = vector.load %arg8[%c40_66, %c0_67] : memref<64x384xf32, #tpu.memory_space<vmem>>, vector<8x384xf32>
    %c16_68 = arith.constant 16 : index
    %c0_69 = arith.constant 0 : index
    %245 = vector.load %arg8[%c16_68, %c0_69] : memref<64x384xf32, #tpu.memory_space<vmem>>, vector<8x384xf32>
    %246 = arith.select %32, %244, %245 : vector<8x384xi1>, vector<8x384xf32>
    %247 = vector.extract_strided_slice %246 {offsets = [0, 0], sizes = [8, 128], strides = [1, 1]} : vector<8x384xf32> to vector<8x128xf32>
    %248 = vector.extract_strided_slice %243 {offsets = [0, 0], sizes = [8, 128], strides = [1, 1]} : vector<8x384xf32> to vector<8x128xf32>
    %249 = arith.addf %247, %248 : vector<8x128xf32>
    %250 = arith.negf %249 : vector<8x128xf32>
    %251 = math.exp %250 : vector<8x128xf32>
    %cst_70 = arith.constant 1.000000e+00 : f32
    %252 = vector.broadcast %cst_70 : f32 to vector<8x128xf32>
    %253 = arith.addf %252, %251 : vector<8x128xf32>
    %254 = arith.divf %252, %253 : vector<8x128xf32>
    %255 = vector.extract_strided_slice %246 {offsets = [0, 128], sizes = [8, 128], strides = [1, 1]} : vector<8x384xf32> to vector<8x128xf32>
    %256 = vector.extract_strided_slice %243 {offsets = [0, 128], sizes = [8, 128], strides = [1, 1]} : vector<8x384xf32> to vector<8x128xf32>
    %257 = arith.mulf %254, %256 : vector<8x128xf32>
    %258 = arith.addf %255, %257 : vector<8x128xf32>
    %259 = math.tanh %258 : vector<8x128xf32>
    %260 = vector.extract_strided_slice %246 {offsets = [0, 256], sizes = [8, 128], strides = [1, 1]} : vector<8x384xf32> to vector<8x128xf32>
    %261 = vector.extract_strided_slice %243 {offsets = [0, 256], sizes = [8, 128], strides = [1, 1]} : vector<8x384xf32> to vector<8x128xf32>
    %262 = arith.addf %260, %261 : vector<8x128xf32>
    %263 = arith.negf %262 : vector<8x128xf32>
    %264 = math.exp %263 : vector<8x128xf32>
    %cst_71 = arith.constant 1.000000e+00 : f32
    %265 = vector.broadcast %cst_71 : f32 to vector<8x128xf32>
    %266 = arith.addf %265, %264 : vector<8x128xf32>
    %267 = arith.divf %265, %266 : vector<8x128xf32>
    %cst_72 = arith.constant 1.000000e+00 : f32
    %268 = vector.broadcast %cst_72 : f32 to vector<8x128xf32>
    %269 = arith.subf %268, %267 : vector<8x128xf32>
    %270 = arith.mulf %269, %259 : vector<8x128xf32>
    %271 = arith.mulf %267, %224 : vector<8x128xf32>
    %272 = arith.addf %270, %271 : vector<8x128xf32>
    %273 = arith.truncf %272 : vector<8x128xf32> to vector<8x128xbf16>
    %274 = vector.extract_strided_slice %273 {offsets = [0, 0], sizes = [8, 64], strides = [1, 1]} : vector<8x128xbf16> to vector<8x64xbf16>
    %cst_73 = arith.constant dense<0.000000e+00> : vector<8x128xf32>
    %275 = tpu.matmul %274, %9, %cst_73 {dimension_numbers = #tpu.dot_dimension_numbers<[1], [0], [0], [1], [0, 0, 1, 1], [], []>} : vector<8x64xbf16>, vector<64x128xbf16>, vector<8x128xf32> -> vector<8x128xf32>
    %276 = vector.extract_strided_slice %273 {offsets = [0, 64], sizes = [8, 64], strides = [1, 1]} : vector<8x128xbf16> to vector<8x64xbf16>
    %cst_74 = arith.constant dense<0.000000e+00> : vector<8x128xf32>
    %277 = tpu.matmul %276, %10, %cst_74 {dimension_numbers = #tpu.dot_dimension_numbers<[1], [0], [0], [1], [0, 0, 1, 1], [], []>} : vector<8x64xbf16>, vector<64x128xbf16>, vector<8x128xf32> -> vector<8x128xf32>
    %278 = arith.addf %153, %275 : vector<8x128xf32>
    %279 = arith.addf %151, %277 : vector<8x128xf32>
    %280 = arith.addf %279, %13 : vector<8x128xf32>
    %281 = math.exp %280 : vector<8x128xf32>
    %282 = arith.select %38, %281, %280 : vector<8x128xi1>, vector<8x128xf32>
    %c0_75 = arith.constant 0 : index
    %c256 = arith.constant 256 : index
    %283 = vector.load %arg7[%c0_75, %c256] : memref<8x1024xf32, #tpu.memory_space<vmem>>, vector<8x128xf32>
    tpu.vector_store %arg7[%c0_75, %c256], %282 {strides = array<i32>} : memref<8x1024xf32, #tpu.memory_space<vmem>>, vector<8x128xf32>,
    %284 = arith.addf %278, %13 : vector<8x128xf32>
    %285 = math.exp %284 : vector<8x128xf32>
    %286 = arith.select %38, %285, %284 : vector<8x128xi1>, vector<8x128xf32>
    %c0_76 = arith.constant 0 : index
    %c640 = arith.constant 640 : index
    %287 = vector.load %arg7[%c0_76, %c640] : memref<8x1024xf32, #tpu.memory_space<vmem>>, vector<8x128xf32>
    tpu.vector_store %arg7[%c0_76, %c640], %286 {strides = array<i32>} : memref<8x1024xf32, #tpu.memory_space<vmem>>, vector<8x128xf32>,
    %288 = arith.truncf %272 : vector<8x128xf32> to vector<8x128xbf16>
    %cst_77 = arith.constant dense<0.000000e+00> : vector<8x384xf32>
    %289 = tpu.matmul %288, %7, %cst_77 {dimension_numbers = #tpu.dot_dimension_numbers<[1], [0], [0], [1], [0, 0, 1, 1], [], []>} : vector<8x128xbf16>, vector<128x384xbf16>, vector<8x384xf32> -> vector<8x384xf32>
    %290 = vector.broadcast %8 : vector<1x384xf32> to vector<8x384xf32>
    %291 = arith.addf %289, %290 : vector<8x384xf32>
    %c48_78 = arith.constant 48 : index
    %c0_79 = arith.constant 0 : index
    %292 = vector.load %arg8[%c48_78, %c0_79] : memref<64x384xf32, #tpu.memory_space<vmem>>, vector<8x384xf32>
    %c8_80 = arith.constant 8 : index
    %c0_81 = arith.constant 0 : index
    %293 = vector.load %arg8[%c8_80, %c0_81] : memref<64x384xf32, #tpu.memory_space<vmem>>, vector<8x384xf32>
    %294 = arith.select %32, %292, %293 : vector<8x384xi1>, vector<8x384xf32>
    %295 = vector.extract_strided_slice %294 {offsets = [0, 0], sizes = [8, 128], strides = [1, 1]} : vector<8x384xf32> to vector<8x128xf32>
    %296 = vector.extract_strided_slice %291 {offsets = [0, 0], sizes = [8, 128], strides = [1, 1]} : vector<8x384xf32> to vector<8x128xf32>
    %297 = arith.addf %295, %296 : vector<8x128xf32>
    %298 = arith.negf %297 : vector<8x128xf32>
    %299 = math.exp %298 : vector<8x128xf32>
    %cst_82 = arith.constant 1.000000e+00 : f32
    %300 = vector.broadcast %cst_82 : f32 to vector<8x128xf32>
    %301 = arith.addf %300, %299 : vector<8x128xf32>
    %302 = arith.divf %300, %301 : vector<8x128xf32>
    %303 = vector.extract_strided_slice %294 {offsets = [0, 128], sizes = [8, 128], strides = [1, 1]} : vector<8x384xf32> to vector<8x128xf32>
    %304 = vector.extract_strided_slice %291 {offsets = [0, 128], sizes = [8, 128], strides = [1, 1]} : vector<8x384xf32> to vector<8x128xf32>
    %305 = arith.mulf %302, %304 : vector<8x128xf32>
    %306 = arith.addf %303, %305 : vector<8x128xf32>
    %307 = math.tanh %306 : vector<8x128xf32>
    %308 = vector.extract_strided_slice %294 {offsets = [0, 256], sizes = [8, 128], strides = [1, 1]} : vector<8x384xf32> to vector<8x128xf32>
    %309 = vector.extract_strided_slice %291 {offsets = [0, 256], sizes = [8, 128], strides = [1, 1]} : vector<8x384xf32> to vector<8x128xf32>
    %310 = arith.addf %308, %309 : vector<8x128xf32>
    %311 = arith.negf %310 : vector<8x128xf32>
    %312 = math.exp %311 : vector<8x128xf32>
    %cst_83 = arith.constant 1.000000e+00 : f32
    %313 = vector.broadcast %cst_83 : f32 to vector<8x128xf32>
    %314 = arith.addf %313, %312 : vector<8x128xf32>
    %315 = arith.divf %313, %314 : vector<8x128xf32>
    %cst_84 = arith.constant 1.000000e+00 : f32
    %316 = vector.broadcast %cst_84 : f32 to vector<8x128xf32>
    %317 = arith.subf %316, %315 : vector<8x128xf32>
    %318 = arith.mulf %317, %307 : vector<8x128xf32>
    %319 = arith.mulf %315, %272 : vector<8x128xf32>
    %320 = arith.addf %318, %319 : vector<8x128xf32>
    %321 = arith.truncf %320 : vector<8x128xf32> to vector<8x128xbf16>
    %322 = vector.extract_strided_slice %321 {offsets = [0, 0], sizes = [8, 64], strides = [1, 1]} : vector<8x128xbf16> to vector<8x64xbf16>
    %cst_85 = arith.constant dense<0.000000e+00> : vector<8x128xf32>
    %323 = tpu.matmul %322, %9, %cst_85 {dimension_numbers = #tpu.dot_dimension_numbers<[1], [0], [0], [1], [0, 0, 1, 1], [], []>} : vector<8x64xbf16>, vector<64x128xbf16>, vector<8x128xf32> -> vector<8x128xf32>
    %324 = vector.extract_strided_slice %321 {offsets = [0, 64], sizes = [8, 64], strides = [1, 1]} : vector<8x128xbf16> to vector<8x64xbf16>
    %cst_86 = arith.constant dense<0.000000e+00> : vector<8x128xf32>
    %325 = tpu.matmul %324, %10, %cst_86 {dimension_numbers = #tpu.dot_dimension_numbers<[1], [0], [0], [1], [0, 0, 1, 1], [], []>} : vector<8x64xbf16>, vector<64x128xbf16>, vector<8x128xf32> -> vector<8x128xf32>
    %326 = arith.addf %115, %323 : vector<8x128xf32>
    %327 = arith.addf %113, %325 : vector<8x128xf32>
    %328 = arith.addf %327, %13 : vector<8x128xf32>
    %329 = math.exp %328 : vector<8x128xf32>
    %330 = arith.select %38, %329, %328 : vector<8x128xi1>, vector<8x128xf32>
    %c0_87 = arith.constant 0 : index
    %c128 = arith.constant 128 : index
    %331 = vector.load %arg7[%c0_87, %c128] : memref<8x1024xf32, #tpu.memory_space<vmem>>, vector<8x128xf32>
    tpu.vector_store %arg7[%c0_87, %c128], %330 {strides = array<i32>} : memref<8x1024xf32, #tpu.memory_space<vmem>>, vector<8x128xf32>,
    %332 = arith.addf %326, %13 : vector<8x128xf32>
    %333 = math.exp %332 : vector<8x128xf32>
    %334 = arith.select %38, %333, %332 : vector<8x128xi1>, vector<8x128xf32>
    %c0_88 = arith.constant 0 : index
    %c768 = arith.constant 768 : index
    %335 = vector.load %arg7[%c0_88, %c768] : memref<8x1024xf32, #tpu.memory_space<vmem>>, vector<8x128xf32>
    tpu.vector_store %arg7[%c0_88, %c768], %334 {strides = array<i32>} : memref<8x1024xf32, #tpu.memory_space<vmem>>, vector<8x128xf32>,
    %336 = arith.truncf %320 : vector<8x128xf32> to vector<8x128xbf16>
    %cst_89 = arith.constant dense<0.000000e+00> : vector<8x384xf32>
    %337 = tpu.matmul %336, %7, %cst_89 {dimension_numbers = #tpu.dot_dimension_numbers<[1], [0], [0], [1], [0, 0, 1, 1], [], []>} : vector<8x128xbf16>, vector<128x384xbf16>, vector<8x384xf32> -> vector<8x384xf32>
    %338 = vector.broadcast %8 : vector<1x384xf32> to vector<8x384xf32>
    %339 = arith.addf %337, %338 : vector<8x384xf32>
    %c56_90 = arith.constant 56 : index
    %c0_91 = arith.constant 0 : index
    %340 = vector.load %arg8[%c56_90, %c0_91] : memref<64x384xf32, #tpu.memory_space<vmem>>, vector<8x384xf32>
    %c0_92 = arith.constant 0 : index
    %c0_93 = arith.constant 0 : index
    %341 = vector.load %arg8[%c0_92, %c0_93] : memref<64x384xf32, #tpu.memory_space<vmem>>, vector<8x384xf32>
    %342 = arith.select %32, %340, %341 : vector<8x384xi1>, vector<8x384xf32>
    %343 = vector.extract_strided_slice %342 {offsets = [0, 0], sizes = [8, 128], strides = [1, 1]} : vector<8x384xf32> to vector<8x128xf32>
    %344 = vector.extract_strided_slice %339 {offsets = [0, 0], sizes = [8, 128], strides = [1, 1]} : vector<8x384xf32> to vector<8x128xf32>
    %345 = arith.addf %343, %344 : vector<8x128xf32>
    %346 = arith.negf %345 : vector<8x128xf32>
    %347 = math.exp %346 : vector<8x128xf32>
    %cst_94 = arith.constant 1.000000e+00 : f32
    %348 = vector.broadcast %cst_94 : f32 to vector<8x128xf32>
    %349 = arith.addf %348, %347 : vector<8x128xf32>
    %350 = arith.divf %348, %349 : vector<8x128xf32>
    %351 = vector.extract_strided_slice %342 {offsets = [0, 128], sizes = [8, 128], strides = [1, 1]} : vector<8x384xf32> to vector<8x128xf32>
    %352 = vector.extract_strided_slice %339 {offsets = [0, 128], sizes = [8, 128], strides = [1, 1]} : vector<8x384xf32> to vector<8x128xf32>
    %353 = arith.mulf %350, %352 : vector<8x128xf32>
    %354 = arith.addf %351, %353 : vector<8x128xf32>
    %355 = math.tanh %354 : vector<8x128xf32>
    %356 = vector.extract_strided_slice %342 {offsets = [0, 256], sizes = [8, 128], strides = [1, 1]} : vector<8x384xf32> to vector<8x128xf32>
    %357 = vector.extract_strided_slice %339 {offsets = [0, 256], sizes = [8, 128], strides = [1, 1]} : vector<8x384xf32> to vector<8x128xf32>
    %358 = arith.addf %356, %357 : vector<8x128xf32>
    %359 = arith.negf %358 : vector<8x128xf32>
    %360 = math.exp %359 : vector<8x128xf32>
    %cst_95 = arith.constant 1.000000e+00 : f32
    %361 = vector.broadcast %cst_95 : f32 to vector<8x128xf32>
    %362 = arith.addf %361, %360 : vector<8x128xf32>
    %363 = arith.divf %361, %362 : vector<8x128xf32>
    %cst_96 = arith.constant 1.000000e+00 : f32
    %364 = vector.broadcast %cst_96 : f32 to vector<8x128xf32>
    %365 = arith.subf %364, %363 : vector<8x128xf32>
    %366 = arith.mulf %365, %355 : vector<8x128xf32>
    %367 = arith.mulf %363, %320 : vector<8x128xf32>
    %368 = arith.addf %366, %367 : vector<8x128xf32>
    %369 = arith.truncf %368 : vector<8x128xf32> to vector<8x128xbf16>
    %370 = vector.extract_strided_slice %369 {offsets = [0, 0], sizes = [8, 64], strides = [1, 1]} : vector<8x128xbf16> to vector<8x64xbf16>
    %cst_97 = arith.constant dense<0.000000e+00> : vector<8x128xf32>
    %371 = tpu.matmul %370, %9, %cst_97 {dimension_numbers = #tpu.dot_dimension_numbers<[1], [0], [0], [1], [0, 0, 1, 1], [], []>} : vector<8x64xbf16>, vector<64x128xbf16>, vector<8x128xf32> -> vector<8x128xf32>
    %372 = vector.extract_strided_slice %369 {offsets = [0, 64], sizes = [8, 64], strides = [1, 1]} : vector<8x128xbf16> to vector<8x64xbf16>
    %cst_98 = arith.constant dense<0.000000e+00> : vector<8x128xf32>
    %373 = tpu.matmul %372, %10, %cst_98 {dimension_numbers = #tpu.dot_dimension_numbers<[1], [0], [0], [1], [0, 0, 1, 1], [], []>} : vector<8x64xbf16>, vector<64x128xbf16>, vector<8x128xf32> -> vector<8x128xf32>
    %374 = arith.addf %77, %371 : vector<8x128xf32>
    %375 = arith.addf %75, %373 : vector<8x128xf32>
    %376 = arith.addf %375, %13 : vector<8x128xf32>
    %377 = math.exp %376 : vector<8x128xf32>
    %378 = arith.select %38, %377, %376 : vector<8x128xi1>, vector<8x128xf32>
    %c0_99 = arith.constant 0 : index
    %c0_100 = arith.constant 0 : index
    %379 = vector.load %arg7[%c0_99, %c0_100] : memref<8x1024xf32, #tpu.memory_space<vmem>>, vector<8x128xf32>
    tpu.vector_store %arg7[%c0_99, %c0_100], %378 {strides = array<i32>} : memref<8x1024xf32, #tpu.memory_space<vmem>>, vector<8x128xf32>,
    %380 = arith.addf %374, %13 : vector<8x128xf32>
    %381 = math.exp %380 : vector<8x128xf32>
    %382 = arith.select %38, %381, %380 : vector<8x128xi1>, vector<8x128xf32>
    %c0_101 = arith.constant 0 : index
    %c896 = arith.constant 896 : index
    %383 = vector.load %arg7[%c0_101, %c896] : memref<8x1024xf32, #tpu.memory_space<vmem>>, vector<8x128xf32>
    tpu.vector_store %arg7[%c0_101, %c896], %382 {strides = array<i32>} : memref<8x1024xf32, #tpu.memory_space<vmem>>, vector<8x128xf32>,
    return
  }
}

</mosaic_0001>

<bundles_post_ra>
// kernel: tpu_custom_call.1
= control target key start
LH: loop header
LB: loop body
LE: loop exit
PB: predicated region body
PF: predicated region fallthrough
CT: control target
= control target key end

     0   :  { %12 = vsyncpa [#allocation4], 0  ;;  %s2943_s0 = inlined_call_operand.vmem [shape: f32[64,16], index: 0, kind: input, shape index: {}]   ;;  %s2944_s1 = inlined_call_operand.hbm [shape: f32[16,384], index: 1, kind: input, shape index: {}]   ;;  %s2945_s2 = inlined_call_operand.vmem [shape: f32[1,384], index: 2, kind: input, shape index: {}]   ;;  %s2946_s3 = inlined_call_operand.hbm [shape: bf16[128,384], index: 3, kind: input, shape index: {}]   ;;  %s2947_s4 = inlined_call_operand.vmem [shape: f32[1,384], index: 4, kind: input, shape index: {}]   ;;  %s2948_s5 = inlined_call_operand.vmem [shape: bf16[128,128], index: 5, kind: input, shape index: {}]   ;;  %s2949_s6 = inlined_call_operand.vmem [shape: f32[1,128], index: 6, kind: input, shape index: {}]   ;;  %s2950_s7 = inlined_call_operand.hbm [shape: f32[8,1024], index: 7, kind: output, shape index: {}]  }
   0x1   :  { %13 = vsyncpa [#allocation7], 0 }
   0x2   :  { %14 = vsyncpa [#allocation5], 0  ;;  %s21_s26 = sshll.u32 %s2944_s1, 4  ;;  %s2055_s27 = smov [#allocation3]   ;;  %s22_s26 = int_to_ptr.hbm [resolvable:$true] %s21_s26 }
   0x3   :  { %s23_s28 = sshll.u32 %s2055_s27, 4  ;;  %s36_s8 = sshll.u32 %s2946_s3, 4  ;;  %s24_s28 = int_to_ptr.vmem [resolvable:$true] %s23_s28  ;;  %s37_s8 = int_to_ptr.hbm [resolvable:$true] %s36_s8 }
   0x4   :  { %s2056_s9 = smov 384   ;;  %s2057_s10 = smov 24  }
   0x5   :  { %29 = dma.hbm_to_vmem [thread:$0]  %s22_s26, 768, %s24_s28, [#allocation4], %s2056_s9, %s2056_s9, %s2057_s10  }
   0x6   :  { %s2058_s11 = smov [#allocation6]   ;;  %s2059_s13 = smov 192  }
   0x7   :  { %s38_s12 = sshll.u32 %s2058_s11, 4  ;;  %s2060_s14 = smov 12   ;;  %s39_s12 = int_to_ptr.vmem [resolvable:$true] %s38_s12 }
   0x8   :  { %44 = dma.hbm_to_vmem [thread:$0]  %s37_s8, 3072, %s39_s12, [#allocation7], %s2059_s13, %s2059_s13, %s2060_s14  }
   0x9   :  { %2049 = dma.done.wait [#allocation4], 768  }
   0xa   :  { %2050 = vsyncadd [#allocation4], 4294966528 }
   0xb   :  { %2051 = dma.done.wait [#allocation7], 3072  }
   0xc   :  { %2052 = vsyncadd [#allocation7], 4294964224  ;;  %v71_v0 = vld [vmem:[#allocation3 + $0x18] sm:$0xff]  ;;  %v73_v1 = vld [vmem:[#allocation3 + $0x28] sm:$0xff]  ;;  %vm82_vm0 = vcmask 130048   ;;  %s1642_s26 = sshll.u32 %s2950_s7, 4  ;;  %s1643_s26 = int_to_ptr.hbm [resolvable:$true] %s1642_s26 }
   0xd   :  { %v68_v2 = vld [vmem:[#allocation3] sm:$0xff]  ;;  %121 = vmatpush.msra.mxu0 %v71_v0  ;;  %1869 = vmatpush.msra.mxu1 %v71_v0  ;;  %v70_v3 = vld [vmem:[#allocation3 + $0x10] sm:$0xff]  ;;  %v1763_v4 = vld [vmem:[#allocation6 + $0xa8] sm:$0xf] }
   0xe   :  { %v1859_v5 = vld [vmem:[#allocation6 + $0xb0] sm:$0xf0]  ;;  %203 = vmatpush.msra.mxu2 %v73_v1  ;;  %v2118_v8 = vld [vmem:[%s2943_s0 + $0x38] sm:$0xff]  ;;  %v1751_v9 = vld [vmem:[#allocation6 + $0x90] sm:$0xf] }
   0xf   :  { %v2110_v6 = vor.u32 %v1859_v5, %v1763_v4  ;;  %v60_v7 = vld [vmem:[%s2943_s0] sm:$0xff]  ;;  %122 = vmatpush.msra.mxu0 %v68_v2  ;;  %1870 = vmatpush.msra.mxu1 %v68_v2  ;;  %v1856_v10 = vld [vmem:[#allocation6 + $0x98] sm:$0xf0]  ;;  %v1739_v15 = vld [vmem:[#allocation6 + $0x78] sm:$0xf] }
  0x10   :  { %v72_v11 = vld [vmem:[#allocation3 + $0x20] sm:$0xff]  ;;  %204 = vmatpush.msra.mxu2 %v70_v3  ;;  %v2121_v12 = vor.u32 %v1856_v10, %v1751_v9  ;;  %v69_v13 = vld [vmem:[#allocation3 + $0x8] sm:$0xff]  ;;  %1653 = vmatmul.msk.f32.vlgmr.msra.gmra.mxu0 %vm82_vm0, %v60_v7  ;;  %v1853_v16 = vld [vmem:[#allocation6 + $0x80] sm:$0xf0] }
  0x11   :  { %488 = vmatpush.bf16.msra.mxu3 %v2110_v6  ;;  %v1771_v14 = vld [vmem:[#allocation6 + $0xb0] sm:$0xf]  ;;  %1660 = vmatmul.msk.f32.vlgmr.msra.gmra.mxu1 %vm82_vm0, %v2118_v8  ;;  %v1860_v17 = vld [vmem:[#allocation6 + $0xb8] sm:$0xf0]  ;;  %v1759_v19 = vld [vmem:[#allocation6 + $0x98] sm:$0xf]  ;;  %v2130_v21 = vor.u32 %v1853_v16, %v1739_v15 }
  0x12   :  { %1669 = vmatmul.msk.f32.vlgmr.msra.gmra.mxu2 %vm82_vm0, %v60_v7  ;;  %162 = vmatpush.msrb.mxu1 %v72_v11  ;;  %v2127_v18 = vor.u32 %v1860_v17, %v1771_v14  ;;  %v1857_v20 = vld [vmem:[#allocation6 + $0xa0] sm:$0xf0]  ;;  %v1727_v22 = vld [vmem:[#allocation6 + $0x60] sm:$0xf]  ;;  %v1850_v23 = vld [vmem:[#allocation6 + $0x68] sm:$0xf0] }
  0x13   :  { %v61_v24 = vld [vmem:[%s2943_s0 + $0x8] sm:$0xff]  ;;  %v2137_v25 = vor.u32 %v1857_v20, %v1759_v19  ;;  %v1747_v26 = vld [vmem:[#allocation6 + $0x80] sm:$0xf]  ;;  %v1854_v27 = vld [vmem:[#allocation6 + $0x88] sm:$0xf0]  ;;  %v2140_v29 = vor.u32 %v1850_v23, %v1727_v22  ;;  %v2061_v16 = vmov 0  }
  0x14   :  { %163 = vmatpush.msrb.mxu1 %v69_v13  ;;  %514 = vmatpush.bf16.msrb.mxu0 %v2127_v18  ;;  %v1858_v28 = vld [vmem:[#allocation6 + $0xac] sm:$0xf]  ;;  %v1765_v30 = vld [vmem:[#allocation6 + $0xb4] sm:$0xf0]  ;;  %v1715_v31 = vld [vmem:[#allocation6 + $0x48] sm:$0xf]  ;;  %v2148_v34 = vor.u32 %v1854_v27, %v1747_v26 }
  0x15   :  { %489 = vmatpush.bf16.msra.mxu3 %v2121_v12  ;;  %v1847_v32 = vld [vmem:[#allocation6 + $0x50] sm:$0xf0]  ;;  %v2144_v33 = vor.u32 %v1858_v28, %v1765_v30  ;;  %v1753_v36 = vld [vmem:[#allocation6 + $0x9c] sm:$0xf0]  ;;  %v1735_v37 = vld [vmem:[#allocation6 + $0x68] sm:$0xf] }
  0x16   :  { %584 = vmatpush.bf16.msra.mxu1 %v2110_v6  ;;  %v1855_v35 = vld [vmem:[#allocation6 + $0x94] sm:$0xf]  ;;  %v2153_v39 = vor.u32 %v1847_v32, %v1715_v31  ;;  %v1703_v40 = vld [vmem:[#allocation6 + $0x30] sm:$0xf]  ;;  %v1844_v41 = vld [vmem:[#allocation6 + $0x38] sm:$0xf0] }
  0x17   :  { %v1851_v38 = vld [vmem:[#allocation6 + $0x70] sm:$0xf0]  ;;  %597 = vmatpush.bf16.msrb.mxu2 %v2144_v33  ;;  %v2155_v42 = vor.u32 %v1855_v35, %v1753_v36  ;;  %v62_v43 = vld [vmem:[%s2943_s0 + $0x10] sm:$0xff]  ;;  %v1852_v45 = vld [vmem:[#allocation6 + $0x7c] sm:$0xf]  ;;  %v2166_v49 = vor.u32 %v1844_v41, %v1703_v40 }
  0x18   :  { %1654 = vmatmul.msk.f32.gmra.mxu0 %vm82_vm0, %v61_v24  ;;  %v2161_v44 = vor.u32 %v1851_v38, %v1735_v37  ;;  %v1741_v46 = vld [vmem:[#allocation6 + $0x84] sm:$0xf0]  ;;  %v1723_v47 = vld [vmem:[#allocation6 + $0x50] sm:$0xf]  ;;  %v1848_v48 = vld [vmem:[#allocation6 + $0x58] sm:$0xf0] }
  0x19   :  { %490 = vmatpush.bf16.msra.mxu3 %v2130_v21  ;;  %1661 = vmatmul.msk.f32.vlgmr.msrb.gmra.mxu1 %vm82_vm0, %v60_v7  ;;  %v1691_v50 = vld [vmem:[#allocation6 + $0x18] sm:$0xf]  ;;  %v1841_v51 = vld [vmem:[#allocation6 + $0x20] sm:$0xf0]  ;;  %v2170_v52 = vor.u32 %v1852_v45, %v1741_v46  ;;  %v2174_v53 = vor.u32 %v1848_v48, %v1723_v47  ;;  %v1729_v55 = vld [vmem:[#allocation6 + $0x6c] sm:$0xf0] }
  0x1a   :  { %1670 = vmatmul.msk.f32.gmra.mxu2 %vm82_vm0, %v61_v24  ;;  %515 = vmatpush.bf16.msrb.mxu0 %v2137_v25  ;;  %v1849_v54 = vld [vmem:[#allocation6 + $0x64] sm:$0xf]  ;;  %v1711_v56 = vld [vmem:[#allocation6 + $0x38] sm:$0xf]  ;;  %v2179_v58 = vor.u32 %v1841_v51, %v1691_v50  ;;  %v1679_v59 = vld [vmem:[#allocation6] sm:$0xf] }
  0x1b   :  { %585 = vmatpush.bf16.msra.mxu1 %v2121_v12  ;;  %598 = vmatpush.bf16.msrb.mxu2 %v2155_v42  ;;  %v1845_v57 = vld [vmem:[#allocation6 + $0x40] sm:$0xf0]  ;;  %v1838_v60 = vld [vmem:[#allocation6 + $0x8] sm:$0xf0]  ;;  %v2181_v61 = vor.u32 %v1849_v54, %v1729_v55  ;;  %v1717_v1 = vld [vmem:[#allocation6 + $0x54] sm:$0xf0] }
  0x1c   :  { %v63_v62 = vld [vmem:[%s2943_s0 + $0x18] sm:$0xff]  ;;  %v2187_v63 = vor.u32 %v1845_v57, %v1711_v56  ;;  %v1699_v2 = vld [vmem:[#allocation6 + $0x20] sm:$0xf]  ;;  %v2192_v4 = vor.u32 %v1838_v60, %v1679_v59  ;;  %v1843_v9 = vld [vmem:[#allocation6 + $0x34] sm:$0xf] }
  0x1d   :  { %491 = vmatpush.bf16.msra.mxu3 %v2140_v29  ;;  %v1846_v0 = vld [vmem:[#allocation6 + $0x4c] sm:$0xf]  ;;  %v1705_v10 = vld [vmem:[#allocation6 + $0x3c] sm:$0xf0]  ;;  %v1687_v11 = vld [vmem:[#allocation6 + $0x8] sm:$0xf] }
  0x1e   :  { %516 = vmatpush.bf16.msrb.mxu0 %v2148_v34  ;;  %v1842_v3 = vld [vmem:[#allocation6 + $0x28] sm:$0xf0]  ;;  %v2196_v5 = vor.u32 %v1846_v0, %v1717_v1  ;;  %v1839_v13 = vld [vmem:[#allocation6 + $0x10] sm:$0xf0]  ;;  %v2209_v15 = vor.u32 %v1843_v9, %v1705_v10  ;;  %v1840_v17 = vld [vmem:[#allocation6 + $0x1c] sm:$0xf] }
  0x1f   :  { %586 = vmatpush.bf16.msra.mxu1 %v2130_v21  ;;  %599 = vmatpush.bf16.msrb.mxu2 %v2170_v52  ;;  %v2200_v7 = vor.u32 %v1842_v3, %v1699_v2  ;;  %v64_v14 = vld [vmem:[%s2943_s0 + $0x20] sm:$0xff]  ;;  %v1693_v19 = vld [vmem:[#allocation6 + $0x24] sm:$0xf0]  ;;  %v2212_v20 = vor.u32 %v1839_v13, %v1687_v11  ;;  %v1837_v23 = vld [vmem:[#allocation6 + $0x4] sm:$0xf] }
  0x20   :  { %1655 = vmatmul.msk.f32.gmra.mxu0 %vm82_vm0, %v62_v43  ;;  %v2220_v22 = vor.u32 %v1840_v17, %v1693_v19  ;;  %v65_v26 = vld [vmem:[%s2943_s0 + $0x28] sm:$0xff]  ;;  %v66_v28 = vld [vmem:[%s2943_s0 + $0x30] sm:$0xff]  ;;  %v74_v30 = vld [vmem:[%s2945_s2] sm:$0x7] }
  0x21   :  { %492 = vmatpush.bf16.msra.mxu3 %v2153_v39  ;;  %1662 = vmatmul.msk.f32.gmra.mxu1 %vm82_vm0, %v61_v24  ;;  %v1681_v24 = vld [vmem:[#allocation6 + $0xc] sm:$0xf0]  ;;  %v2304_v32 = vperm.slane %v74_v30, 0  ;;  %v2322_v51 = vperm.slane %v74_v30, 2  ;;  %v2324_v54 = vperm.slane %v74_v30, 1 }
  0x22   :  { %1671 = vmatmul.msk.f32.gmra.mxu2 %vm82_vm0, %v62_v43  ;;  %517 = vmatpush.bf16.msrb.mxu0 %v2161_v44  ;;  %2968 = vst [vmem:[#allocation12_spill] sm:$0xff] %v2220_v22  ;;  %v2231_v27 = vor.u32 %v1837_v23, %v1681_v24  ;;  %v2336_v0 = vld [vmem:[%s2947_s4] sm:$0x7]  ;;  %s2062_s4 = smov 64  }
  0x23   :  { %587 = vmatpush.bf16.msra.mxu1 %v2140_v29  ;;  %600 = vmatpush.bf16.msrb.mxu2 %v2181_v61  ;;  %v2344_v13 = vperm.slane %v2336_v0, 0 }
  0x24   :  { %2969 = vst [vmem:[#allocation13_spill] sm:$0xff] %v2231_v27 }
  0x25   :  { %493 = vmatpush.bf16.msra.mxu3 %v2166_v49 }
  0x26   :  { %518 = vmatpush.bf16.msrb.mxu0 %v2174_v53 }
  0x27   :  { %588 = vmatpush.bf16.msra.mxu1 %v2153_v39  ;;  %601 = vmatpush.bf16.msrb.mxu2 %v2196_v5 }
  0x28   :  { %1656 = vmatmul.msk.f32.gmra.mxu0 %vm82_vm0, %v63_v62 }
  0x29   :  { %494 = vmatpush.bf16.msra.mxu3 %v2179_v58  ;;  %1663 = vmatmul.msk.f32.gmra.mxu1 %vm82_vm0, %v62_v43 }
  0x2a   :  { %1672 = vmatmul.msk.f32.gmra.mxu2 %vm82_vm0, %v63_v62  ;;  %519 = vmatpush.bf16.msrb.mxu0 %v2187_v63 }
  0x2b   :  { %589 = vmatpush.bf16.msra.mxu1 %v2166_v49  ;;  %602 = vmatpush.bf16.msrb.mxu2 %v2209_v15 }
  0x2d   :  { %495 = vmatpush.bf16.msra.mxu3 %v2192_v4 }
  0x2e   :  { %520 = vmatpush.bf16.msrb.mxu0 %v2200_v7 }
  0x2f   :  { %590 = vmatpush.bf16.msra.mxu1 %v2179_v58  ;;  %603 = vmatpush.bf16.msrb.mxu2 %v2220_v22 }
  0x30   :  { %496 = vmatmul.bf16.vlgmr.msra.gmra.mxu3 %v2061_v16  ;;  %1657 = vmatmul.msk.f32.gmra.mxu0 %vm82_vm0, %v64_v14 }
  0x31   :  { %501 = vmatpush.bf16.msrb.mxu3 %v2144_v33  ;;  %1664 = vmatmul.msk.f32.gmra.mxu1 %vm82_vm0, %v63_v62 }
  0x32   :  { %1673 = vmatmul.msk.f32.gmra.mxu2 %vm82_vm0, %v64_v14  ;;  %521 = vmatpush.bf16.msrb.mxu0 %v2212_v20 }
  0x33   :  { %591 = vmatpush.bf16.msra.mxu1 %v2192_v4  ;;  %604 = vmatpush.bf16.msrb.mxu2 %v2231_v27 }
  0x35   :  { %502 = vmatpush.bf16.msrb.mxu3 %v2155_v42 }
  0x36   :  { %680 = vmatpush.bf16.msra.mxu0 %v2110_v6 }
  0x37   :  { %693 = vmatpush.bf16.msrb.mxu1 %v2144_v33  ;;  %706 = vmatpush.bf16.msra.mxu2 %v2127_v18 }
  0x38   :  { %1658 = vmatmul.msk.f32.gmra.mxu0 %vm82_vm0, %v65_v26 }
  0x39   :  { %503 = vmatpush.bf16.msrb.mxu3 %v2170_v52  ;;  %1665 = vmatmul.msk.f32.gmra.mxu1 %vm82_vm0, %v64_v14 }
  0x3a   :  { %681 = vmatpush.bf16.msra.mxu0 %v2121_v12  ;;  %1674 = vmatmul.msk.f32.gmra.mxu2 %vm82_vm0, %v65_v26 }
  0x3b   :  { %694 = vmatpush.bf16.msrb.mxu1 %v2155_v42  ;;  %707 = vmatpush.bf16.msra.mxu2 %v2137_v25 }
  0x3d   :  { %504 = vmatpush.bf16.msrb.mxu3 %v2181_v61 }
  0x3e   :  { %682 = vmatpush.bf16.msra.mxu0 %v2130_v21 }
  0x3f   :  { %695 = vmatpush.bf16.msrb.mxu1 %v2170_v52  ;;  %708 = vmatpush.bf16.msra.mxu2 %v2148_v34 }
  0x40   :  { %1659 = vmatmul.msk.f32.gmra.mxu0 %vm82_vm0, %v66_v28 }
  0x41   :  { %505 = vmatpush.bf16.msrb.mxu3 %v2196_v5  ;;  %1666 = vmatmul.msk.f32.gmra.mxu1 %vm82_vm0, %v65_v26 }
  0x42   :  { %683 = vmatpush.bf16.msra.mxu0 %v2140_v29  ;;  %1675 = vmatmul.msk.f32.gmra.mxu2 %vm82_vm0, %v66_v28 }
  0x43   :  { %696 = vmatpush.bf16.msrb.mxu1 %v2181_v61  ;;  %709 = vmatpush.bf16.msra.mxu2 %v2161_v44 }
  0x45   :  { %506 = vmatpush.bf16.msrb.mxu3 %v2209_v15 }
  0x46   :  { %684 = vmatpush.bf16.msra.mxu0 %v2153_v39 }
  0x47   :  { %697 = vmatpush.bf16.msrb.mxu1 %v2196_v5  ;;  %710 = vmatpush.bf16.msra.mxu2 %v2174_v53 }
  0x48   :  { %522 = vmatmul.bf16.vlgmr.msrb.gmra.mxu0 %v2061_v16 }
  0x49   :  { %507 = vmatpush.bf16.msrb.mxu3 %v2220_v22  ;;  %1667 = vmatmul.msk.f32.gmra.mxu1 %vm82_vm0, %v66_v28 }
  0x4a   :  { %685 = vmatpush.bf16.msra.mxu0 %v2166_v49  ;;  %1676 = vmatmul.msk.f32.gmra.mxu2 %vm82_vm0, %v2118_v8 }
  0x4b   :  { %698 = vmatpush.bf16.msrb.mxu1 %v2209_v15  ;;  %711 = vmatpush.bf16.msra.mxu2 %v2187_v63 }
  0x4d   :  { %508 = vmatpush.bf16.msrb.mxu3 %v2231_v27 }
  0x4e   :  { %686 = vmatpush.bf16.msra.mxu0 %v2179_v58 }
  0x4f   :  { %699 = vmatpush.bf16.msrb.mxu1 %v2220_v22  ;;  %712 = vmatpush.bf16.msra.mxu2 %v2200_v7 }
  0x50   :  { %509 = vmatmul.bf16.vlgmr.msrb.gmra.mxu3 %v2061_v16 }
  0x51   :  { %610 = vmatpush.bf16.msra.mxu3 %v2127_v18  ;;  %1668 = vmatmul.msk.f32.gmra.mxu1 %vm82_vm0, %v2118_v8  ;;  %v307_v8 = vlaneseq }
  0x52   :  { %687 = vmatpush.bf16.msra.mxu0 %v2192_v4 }
  0x53   :  { %700 = vmatpush.bf16.msrb.mxu1 %v2231_v27  ;;  %713 = vmatpush.bf16.msra.mxu2 %v2212_v20  ;;  %v2302_v31 = vand.u32 127, %v307_v8 }
  0x55   :  { %611 = vmatpush.bf16.msra.mxu3 %v2137_v25  ;;  %2970 = vst [vmem:[#allocation14_spill] sm:$0xff] %v2302_v31  ;;  %vm347_vm1 = vcmp.lt.s32.totalorder %v2302_v31, 64  ;;  %v310_v2 = vadd.s32 256, %v2302_v31  ;;  %v309_v14 = vadd.s32 128, %v2302_v31 }
  0x56   :  { %789 = vmatpush.bf16.msrb.mxu0 %v2144_v33 }
  0x57   :  { %v329_v16 = vand.u32 127, %v310_v2  ;;  %v322_v28 = vand.u32 127, %v309_v14 }
  0x59   :  { %612 = vmatpush.bf16.msra.mxu3 %v2148_v34  ;;  %vm2358_vm2 = vcmp.lt.s32.totalorder %v329_v16, 64  ;;  %vm2373_vm3 = vcmp.lt.s32.totalorder %v322_v28, 64 }
  0x5a   :  { %790 = vmatpush.bf16.msrb.mxu0 %v2155_v42 }
  0x5d   :  { %613 = vmatpush.bf16.msra.mxu3 %v2161_v44 }
  0x5e   :  { %791 = vmatpush.bf16.msrb.mxu0 %v2170_v52 }
  0x61   :  { %614 = vmatpush.bf16.msra.mxu3 %v2174_v53 }
  0x62   :  { %792 = vmatpush.bf16.msrb.mxu0 %v2181_v61 }
  0x65   :  { %615 = vmatpush.bf16.msra.mxu3 %v2187_v63 }
  0x66   :  { %793 = vmatpush.bf16.msrb.mxu0 %v2196_v5 }
  0x69   :  { %616 = vmatpush.bf16.msra.mxu3 %v2200_v7 }
  0x6a   :  { %794 = vmatpush.bf16.msrb.mxu0 %v2209_v15 }
  0x6d   :  { %617 = vmatpush.bf16.msra.mxu3 %v2212_v20 }
  0x6e   :  { %795 = vmatpush.bf16.msrb.mxu0 %v2220_v22 }
  0x71   :  { %776 = vmatpush.bf16.msrb.mxu3 %v2110_v6 }
  0x72   :  { %796 = vmatpush.bf16.msrb.mxu0 %v2231_v27 }
  0x75   :  { %777 = vmatpush.bf16.msrb.mxu3 %v2121_v12 }
  0x79   :  { %778 = vmatpush.bf16.msrb.mxu3 %v2130_v21 }
  0x7d   :  { %779 = vmatpush.bf16.msrb.mxu3 %v2140_v29 }
  0x81   :  { %780 = vmatpush.bf16.msrb.mxu3 %v2153_v39 }
  0x85   :  { %781 = vmatpush.bf16.msrb.mxu3 %v2166_v49 }
  0x89   :  { %782 = vmatpush.bf16.msrb.mxu3 %v2179_v58 }
  0x8d   :  { %783 = vmatpush.bf16.msrb.mxu3 %v2192_v4  ;;  %v124_v35 = vpop.f32.mrf.mxu0 }
  0x8e   :  { %v145_v36 = vpop.f32.mrf.mxu1  ;;  %v125_v37 = vadd.f32 %v124_v35, %v2304_v32 }
  0x8f   :  { %v146_v38 = vadd.f32 %v145_v36, %v2304_v32 }
  0x91   :  { %v2311_v40 = vsel %vm347_vm1, %v146_v38, %v125_v37  ;;  %v533_v26 = vsel %vm347_vm1, %v125_v37, %v146_v38 }
  0x92   :  { %2971 = vst [vmem:[#allocation15_spill] sm:$0xff] %v2311_v40 }
  0x95   :  { %v2313_v41 = vpop.f32.mrf.mxu2  ;;  %v127_v43 = vpop.f32.mrf.mxu0 }
  0x96   :  { %v2315_v45 = vpop.f32.mrf.mxu1  ;;  %v128_v46 = vadd.f32 %v127_v43, %v2304_v32 }
  0x97   :  { %v2475_v40 = vadd.f32 %v2315_v45, %v2324_v54 }
  0x99   :  { %2986 = vst [vmem:[#allocation26_spill] sm:$0xff] %v2475_v40 }
  0x9d   :  { %v2318_v47 = vpop.f32.mrf.mxu2  ;;  %v130_v48 = vpop.f32.mrf.mxu0 }
  0x9e   :  { %v2320_v50 = vpop.f32.mrf.mxu1 }
  0xa5   :  { %v212_v55 = vpop.f32.mrf.mxu2  ;;  %v133_v57 = vpop.f32.mrf.mxu0 }
  0xa6   :  { %v2327_v56 = vadd.f32 %v212_v55, %v2322_v51  ;;  %v171_v59 = vpop.f32.mrf.mxu1  ;;  %v134_v60 = vadd.f32 %v133_v57, %v2304_v32 }
  0xa7   :  { %v2331_v62 = vadd.f32 %v171_v59, %v2324_v54  ;;  %v131_v59 = vadd.f32 %v130_v48, %v2304_v32 }
  0xad   :  { %v215_v1 = vpop.f32.mrf.mxu2  ;;  %v136_v3 = vpop.f32.mrf.mxu0 }
  0xae   :  { %v174_v9 = vpop.f32.mrf.mxu1  ;;  %v137_v10 = vadd.f32 %v136_v3, %v2304_v32  ;;  %v2363_v36 = vadd.f32 %v215_v1, %v2322_v51 }
  0xaf   :  { %v2341_v11 = vadd.f32 %v174_v9, %v2324_v54 }
  0xb0   :  { %v2349_v17 = vsel %vm347_vm1, %v134_v60, %v137_v10  ;;  %v2353_v19 = vsel %vm347_vm1, %v137_v10, %v134_v60 }
  0xb1   :  { %2972 = vst [vmem:[#allocation16_spill] sm:$0xff] %v2353_v19 }
  0xb3   :  { %v497_v23 = vpop.f32.mrf.mxu3 }
  0xb4   :  { %v498_v24 = vadd.f32 %v497_v23, %v2344_v13 }
  0xb5   :  { %v218_v30 = vpop.f32.mrf.mxu2  ;;  %v139_v55 = vpop.f32.mrf.mxu0 }
  0xb6   :  { %v536_v8 = vadd.f32 %v533_v26, %v498_v24  ;;  %v2366_v43 = vadd.f32 %v218_v30, %v2322_v51  ;;  %v177_v57 = vpop.f32.mrf.mxu1  ;;  %v140_v37 = vadd.f32 %v139_v55, %v2304_v32 }
  0xb7   :  { %v2371_v38 = vadd.f32 %v177_v57, %v2324_v54 }
  0xb8   :  { %v1773_v60 = vmul.f32 -1.442695, %v536_v8  ;;  %v2395_v10 = vsel %vm347_vm1, %v131_v59, %v140_v37  ;;  %v2399_v16 = vsel %vm347_vm1, %v140_v37, %v131_v59 }
  0xb9   :  { %2975 = vst [vmem:[#allocation17_spill] sm:$0xff] %v2371_v38 }
  0xba   :  { %1881 = vpow2.f32 %v1773_v60  ;;  %2978 = vst [vmem:[#allocation18_spill] sm:$0xff] %v2399_v16 }
  0xbb   :  { %v499_v14 = vpop.f32.mrf.mxu3 }
  0xbd   :  { %v221_v23 = vpop.f32.mrf.mxu2  ;;  %v142_v26 = vpop.f32.mrf.mxu0 }
  0xbe   :  { %v2402_v24 = vadd.f32 %v221_v23, %v2322_v51  ;;  %v180_v28 = vpop.f32.mrf.mxu1  ;;  %v143_v30 = vadd.f32 %v142_v26, %v2304_v32  ;;  %v2441_v32 = vadd.f32 %v2320_v50, %v2324_v54 }
  0xbf   :  { %v2406_v55 = vadd.f32 %v180_v28, %v2324_v54  ;;  %v2434_v28 = vadd.f32 %v2318_v47, %v2322_v51  ;;  %v2468_v47 = vadd.f32 %v2313_v41, %v2322_v51 }
  0xc0   :  { %v1882_v8 = vpop.eup %1881  ;;  %v2426_v14 = vsel %vm347_vm1, %v128_v46, %v143_v30  ;;  %v2430_v23 = vsel %vm347_vm1, %v143_v30, %v128_v46  ;;  %2982 = vst [vmem:[#allocation22_spill] sm:$0xff] %v2441_v32 }
  0xc1   :  { %v540_v57 = vadd.f32 1.0, %v1882_v8  ;;  %2979 = vst [vmem:[#allocation19_spill] sm:$0xff] %v2430_v23 }
  0xc2   :  { %2980 = vst [vmem:[#allocation20_spill] sm:$0xff] %v2434_v28 }
  0xc3   :  { %1883 = vrcp.f32 %v540_v57  ;;  %2984 = vst [vmem:[#allocation24_spill] sm:$0xff] %v2468_v47  ;;  %v552_v16 = vand.u32 2147483648, %v540_v57  ;;  %vm546_vm5 = vweird.f32 %v540_v57  ;;  %v550_v19 = vand.u32 2147483647, %v540_v57 }
  0xc5   :  { %v224_v26 = vpop.f32.mrf.mxu2  ;;  %v523_v9 = vpop.f32.mrf.mxu0  ;;  %vm551_vm7 = vcmp.eq.f32.partialorder %v550_v19, 8.507059e+37 }
  0xc6   :  { %v2437_v8 = vadd.f32 %v224_v26, %v2322_v51  ;;  %v183_v59 = vpop.f32.mrf.mxu1  ;;  %v2463_v26 = vperm.slane %v2336_v0, 2 }
  0xc7   :  { %v2444_v48 = vadd.f32 %v183_v59, %v2324_v54 }
  0xc8   :  { %2981 = vst [vmem:[#allocation21_spill] sm:$0xff] %v2437_v8  ;;  %v524_v1 = vadd.f32 %v523_v9, %v2463_v26 }
  0xc9   :  { %2983 = vst [vmem:[#allocation23_spill] sm:$0xff] %v2444_v48  ;;  %v1884_v30 = vpop.eup %1883 }
  0xca   :  { %v542_v3 = vmul.f32 %v1884_v30, %v540_v57  ;;  %vm547_vm4 = vweird.f32 %v1884_v30 }
  0xcb   :  { %vm548_vm6 = vmor %vm546_vm5, %vm547_vm4 }
  0xcc   :  { %v543_v41 = vsub.f32 1.0, %v542_v3  ;;  %v2493_v3 = vperm.slane %v2336_v0, 1 }
  0xcd   :  { %v227_v37 = vpop.f32.mrf.mxu2  ;;  %v525_v46 = vpop.f32.mrf.mxu0 }
  0xce   :  { %v2471_v60 = vadd.f32 %v227_v37, %v2322_v51  ;;  %v186_v50 = vpop.f32.mrf.mxu1  ;;  %v544_v46 = vmul.f32 %v1884_v30, %v543_v41  ;;  %v553_v51 = vor.u32 1.1754944e-38, %v552_v16 }
  0xcf   :  { %v2478_v59 = vadd.f32 %v186_v50, %v2324_v54 }
  0xd0   :  { %2985 = vst [vmem:[#allocation25_spill] sm:$0xff] %v2471_v60  ;;  %v535_v9 = vsel %vm2358_vm2, %v2468_v47, %v2471_v60  ;;  %v545_v50 = vadd.f32 %v1884_v30, %v544_v46 }
  0xd1   :  { %2987 = vst [vmem:[#allocation27_spill] sm:$0xff] %v2478_v59  ;;  %v559_v37 = vadd.f32 %v535_v9, %v524_v1 }
  0xd2   :  { %v549_v9 = vsel %vm548_vm6, %v1884_v30, %v545_v50 }
  0xd3   :  { %v510_v23 = vpop.f32.mrf.mxu3  ;;  %v1774_v54 = vmul.f32 -1.442695, %v559_v37  ;;  %v554_v41 = vsel %vm551_vm7, %v553_v51, %v549_v9 }
  0xd4   :  { %v511_v45 = vadd.f32 %v510_v23, %v2493_v3 }
  0xd5   :  { %1885 = vpow2.f32 %v1774_v54 }
  0xd6   :  { %v556_v37 = vmul.f32 %v554_v41, %v511_v45 }
  0xdb   :  { %v512_v31 = vpop.f32.mrf.mxu3  ;;  %v1886_v38 = vpop.eup %1885 }
  0xdc   :  { %v563_v1 = vadd.f32 1.0, %v1886_v38  ;;  %v534_v31 = vsel %vm2373_vm3, %v2475_v40, %v2478_v59 }
  0xdd   :  { %v557_v0 = vadd.f32 %v556_v37, %v534_v31 }
  0xde   :  { %1887 = vrcp.f32 %v563_v1  ;;  %v575_v47 = vand.u32 2147483648, %v563_v1  ;;  %v573_v38 = vand.u32 2147483647, %v563_v1  ;;  %vm569_vm9 = vweird.f32 %v563_v1 }
  0xdf   :  { %1889 = vtanh.f32 %v557_v0 }
  0xe0   :  { %v576_v19 = vor.u32 1.1754944e-38, %v575_v47  ;;  %vm574_vm11 = vcmp.eq.f32.partialorder %v573_v38, 8.507059e+37  ;;  %v2988_v38 = vsel %vm2358_vm2, %v2434_v28, %v2437_v8 }
  0xe4   :  { %v1888_v54 = vpop.eup %1887 }
  0xe5   :  { %v565_v46 = vmul.f32 %v1888_v54, %v563_v1  ;;  %vm570_vm8 = vweird.f32 %v1888_v54  ;;  %v1890_v45 = vpop.eup %1889 }
  0xe6   :  { %vm571_vm10 = vmor %vm569_vm9, %vm570_vm8 }
  0xe7   :  { %v566_v57 = vsub.f32 1.0, %v565_v46 }
  0xe9   :  { %v567_v60 = vmul.f32 %v1888_v54, %v566_v57 }
  0xeb   :  { %v568_v16 = vadd.f32 %v1888_v54, %v567_v60 }
  0xed   :  { %v572_v23 = vsel %vm571_vm10, %v1888_v54, %v568_v16 }
  0xee   :  { %v577_v30 = vsel %vm574_vm11, %v576_v19, %v572_v23 }
  0xef   :  { %v579_v51 = vsub.f32 1.0, %v577_v30  ;;  %v581_v9 = vmul.f32 0.0, %v577_v30 }
  0xf1   :  { %v580_v50 = vmul.f32 %v1890_v45, %v579_v51 }
  0xf3   :  { %v2500_v41 = vadd.f32 %v581_v9, %v580_v50 }
  0xf5   :  { %v2504_v37 = vpack.c.bf16 %v2500_v41, %v2500_v41 }
  0xf7   :  { %592 = vmatmul.bf16.vlgmr.msra.gmra.mxu1 %v2504_v37  ;;  %605 = vmatmul.bf16.vlgmr.msrb.gmra.mxu2 %v2504_v37 }
  0xf8   :  { %618 = vmatmul.bf16.vlgmr.msra.gmra.mxu3 %v2504_v37  ;;  %802 = vmatpush.bf16.msra.mxu1 %v2127_v18 }
  0xf9   :  { %872 = vmatpush.bf16.msrb.mxu2 %v2110_v6  ;;  %885 = vmatpush.bf16.msra.mxu3 %v2144_v33 }
  0xfc   :  { %803 = vmatpush.bf16.msra.mxu1 %v2137_v25 }
  0xfd   :  { %873 = vmatpush.bf16.msrb.mxu2 %v2121_v12  ;;  %886 = vmatpush.bf16.msra.mxu3 %v2155_v42 }
 0x100   :  { %804 = vmatpush.bf16.msra.mxu1 %v2148_v34 }
 0x101   :  { %874 = vmatpush.bf16.msrb.mxu2 %v2130_v21  ;;  %887 = vmatpush.bf16.msra.mxu3 %v2170_v52 }
 0x104   :  { %805 = vmatpush.bf16.msra.mxu1 %v2161_v44 }
 0x105   :  { %875 = vmatpush.bf16.msrb.mxu2 %v2140_v29  ;;  %888 = vmatpush.bf16.msra.mxu3 %v2181_v61 }
 0x108   :  { %806 = vmatpush.bf16.msra.mxu1 %v2174_v53 }
 0x109   :  { %876 = vmatpush.bf16.msrb.mxu2 %v2153_v39  ;;  %889 = vmatpush.bf16.msra.mxu3 %v2196_v5 }
 0x10c   :  { %807 = vmatpush.bf16.msra.mxu1 %v2187_v63 }
 0x10d   :  { %877 = vmatpush.bf16.msrb.mxu2 %v2166_v49  ;;  %890 = vmatpush.bf16.msra.mxu3 %v2209_v15 }
 0x110   :  { %808 = vmatpush.bf16.msra.mxu1 %v2200_v7 }
 0x111   :  { %878 = vmatpush.bf16.msrb.mxu2 %v2179_v58  ;;  %891 = vmatpush.bf16.msra.mxu3 %v2220_v22 }
 0x114   :  { %809 = vmatpush.bf16.msra.mxu1 %v2212_v20 }
 0x115   :  { %879 = vmatpush.bf16.msrb.mxu2 %v2192_v4  ;;  %892 = vmatpush.bf16.msra.mxu3 %v2231_v27 }
 0x174   :  { %v593_v60 = vpop.f32.mrf.mxu1 }
 0x175   :  { %v594_v47 = vadd.f32 %v593_v60, %v2344_v13 }
 0x177   :  { %v632_v1 = vadd.f32 %v2426_v14, %v594_v47 }
 0x179   :  { %v1775_v54 = vmul.f32 -1.442695, %v632_v1 }
 0x17a   :  { %v606_v46 = vpop.f32.mrf.mxu2 }
 0x17b   :  { %1891 = vpow2.f32 %v1775_v54  ;;  %v619_v31 = vpop.f32.mrf.mxu3 }
 0x17c   :  { %v620_v0 = vadd.f32 %v619_v31, %v2463_v26  ;;  %v595_v57 = vpop.f32.mrf.mxu1 }
 0x17e   :  { %v655_v16 = vadd.f32 %v2988_v38, %v620_v0 }
 0x180   :  { %v1776_v19 = vmul.f32 -1.442695, %v655_v16  ;;  %v607_v16 = vadd.f32 %v606_v46, %v2493_v3 }
 0x181   :  { %v1892_v23 = vpop.eup %1891 }
 0x182   :  { %v636_v30 = vadd.f32 1.0, %v1892_v23  ;;  %1893 = vpow2.f32 %v1776_v19  ;;  %v608_v51 = vpop.f32.mrf.mxu2 }
 0x183   :  { %v621_v45 = vpop.f32.mrf.mxu3 }
 0x184   :  { %1895 = vrcp.f32 %v636_v30  ;;  %v648_v1 = vand.u32 2147483648, %v636_v30  ;;  %v646_v31 = vand.u32 2147483647, %v636_v30  ;;  %vm642_vm13 = vweird.f32 %v636_v30 }
 0x186   :  { %v649_v0 = vor.u32 1.1754944e-38, %v648_v1  ;;  %vm647_vm15 = vcmp.eq.f32.partialorder %v646_v31, 8.507059e+37 }
 0x188   :  { %v1894_v14 = vpop.eup %1893 }
 0x189   :  { %v659_v50 = vadd.f32 1.0, %v1894_v14 }
 0x18a   :  { %v1896_v9 = vpop.eup %1895 }
 0x18b   :  { %v638_v60 = vmul.f32 %v1896_v9, %v636_v30  ;;  %1897 = vrcp.f32 %v659_v50  ;;  %vm643_vm12 = vweird.f32 %v1896_v9  ;;  %v671_v14 = vand.u32 2147483648, %v659_v50 }
 0x18c   :  { %vm644_vm14 = vmor %vm642_vm13, %vm643_vm12  ;;  %vm665_vm1 = vweird.f32 %v659_v50 }
 0x18d   :  { %v639_v47 = vsub.f32 1.0, %v638_v60  ;;  %v669_v60 = vand.u32 2147483647, %v659_v50  ;;  %v672_v46 = vor.u32 1.1754944e-38, %v671_v14 }
 0x18f   :  { %v640_v54 = vmul.f32 %v1896_v9, %v639_v47  ;;  %v2989_v47 = vsel %vm2373_vm3, %v2441_v32, %v2444_v48  ;;  %vm670_vm5 = vcmp.eq.f32.partialorder %v669_v60, 8.507059e+37 }
 0x191   :  { %v1898_v57 = vpop.eup %1897  ;;  %v641_v40 = vadd.f32 %v1896_v9, %v640_v54 }
 0x192   :  { %v661_v38 = vmul.f32 %v1898_v57, %v659_v50  ;;  %vm666_vm0 = vweird.f32 %v1898_v57 }
 0x193   :  { %v645_v19 = vsel %vm644_vm14, %v1896_v9, %v641_v40  ;;  %vm667_vm4 = vmor %vm665_vm1, %vm666_vm0 }
 0x194   :  { %v650_v23 = vsel %vm647_vm15, %v649_v0, %v645_v19  ;;  %v662_v51 = vsub.f32 1.0, %v661_v38 }
 0x195   :  { %v652_v45 = vmul.f32 %v650_v23, %v607_v16 }
 0x196   :  { %v663_v59 = vmul.f32 %v1898_v57, %v662_v51 }
 0x197   :  { %v653_v30 = vadd.f32 %v652_v45, %v2989_v47 }
 0x198   :  { %v664_v54 = vadd.f32 %v1898_v57, %v663_v59 }
 0x199   :  { %1899 = vtanh.f32 %v653_v30 }
 0x19a   :  { %v668_v40 = vsel %vm667_vm4, %v1898_v57, %v664_v54  ;;  %v2991_v54 = vsel %vm2358_vm2, %v2327_v56, %v2402_v24 }
 0x19b   :  { %v673_v9 = vsel %vm670_vm5, %v672_v46, %v668_v40 }
 0x19c   :  { %v675_v1 = vsub.f32 1.0, %v673_v9  ;;  %v677_v38 = vmul.f32 %v673_v9, %v2500_v41 }
 0x19f   :  { %v1900_v31 = vpop.eup %1899 }
 0x1a0   :  { %v676_v0 = vmul.f32 %v1900_v31, %v675_v1 }
 0x1a2   :  { %v2548_v16 = vadd.f32 %v677_v38, %v676_v0 }
 0x1a4   :  { %v2552_v19 = vpack.c.bf16 %v2548_v16, %v2548_v16 }
 0x1a6   :  { %2990 = vst [vmem:[#allocation28_spill] sm:$0xff] %v2552_v19  ;;  %688 = vmatmul.bf16.vlgmr.msra.gmra.mxu0 %v2552_v19  ;;  %701 = vmatmul.bf16.vlgmr.msrb.gmra.mxu1 %v2552_v19  ;;  %v1409_v59 = vunpack.c.l.b16 %v2552_v19 }
 0x1a7   :  { %714 = vmatmul.bf16.vlgmr.msra.gmra.mxu2 %v2552_v19  ;;  %898 = vmatpush.bf16.msra.mxu0 %v2127_v18 }
 0x1a8   :  { %v1410_v50 = vpack.c.b16 %v1409_v59, %v1409_v59 }
 0x1aa   :  { %1411 = vrot.lane.b32.xlu2 %v1410_v50, %s2062_s4 }
 0x1ab   :  { %899 = vmatpush.bf16.msra.mxu0 %v2137_v25 }
 0x1af   :  { %900 = vmatpush.bf16.msra.mxu0 %v2148_v34 }
 0x1b3   :  { %901 = vmatpush.bf16.msra.mxu0 %v2161_v44 }
 0x1b7   :  { %902 = vmatpush.bf16.msra.mxu0 %v2174_v53 }
 0x1bb   :  { %903 = vmatpush.bf16.msra.mxu0 %v2187_v63 }
 0x1bf   :  { %904 = vmatpush.bf16.msra.mxu0 %v2200_v7 }
 0x1c3   :  { %905 = vmatpush.bf16.msra.mxu0 %v2212_v20 }
 0x223   :  { %v689_v41 = vpop.f32.mrf.mxu0  ;;  %v702_v57 = vpop.f32.mrf.mxu1 }
 0x224   :  { %v690_v23 = vadd.f32 %v689_v41, %v2344_v13 }
 0x226   :  { %v728_v51 = vadd.f32 %v2395_v10, %v690_v23 }
 0x228   :  { %v1777_v45 = vmul.f32 -1.442695, %v728_v51 }
 0x22a   :  { %1901 = vpow2.f32 %v1777_v45  ;;  %v715_v14 = vpop.f32.mrf.mxu2 }
 0x22b   :  { %v716_v60 = vadd.f32 %v715_v14, %v2463_v26  ;;  %v691_v47 = vpop.f32.mrf.mxu0  ;;  %v704_v30 = vpop.f32.mrf.mxu1 }
 0x22c   :  { %v703_v30 = vadd.f32 %v702_v57, %v2493_v3 }
 0x22d   :  { %v751_v46 = vadd.f32 %v2991_v54, %v716_v60 }
 0x22f   :  { %v1778_v40 = vmul.f32 -1.442695, %v751_v46 }
 0x230   :  { %v1902_v9 = vpop.eup %1901 }
 0x231   :  { %v732_v1 = vadd.f32 1.0, %v1902_v9  ;;  %1903 = vpow2.f32 %v1778_v40 }
 0x232   :  { %v717_v31 = vpop.f32.mrf.mxu2 }
 0x233   :  { %1905 = vrcp.f32 %v732_v1  ;;  %v744_v41 = vand.u32 2147483648, %v732_v1  ;;  %v742_v51 = vand.u32 2147483647, %v732_v1  ;;  %vm738_vm7 = vweird.f32 %v732_v1 }
 0x235   :  { %v745_v60 = vor.u32 1.1754944e-38, %v744_v41  ;;  %vm743_vm9 = vcmp.eq.f32.partialorder %v742_v51, 8.507059e+37 }
 0x237   :  { %v1904_v10 = vpop.eup %1903 }
 0x238   :  { %v755_v0 = vadd.f32 1.0, %v1904_v10 }
 0x239   :  { %v1906_v38 = vpop.eup %1905 }
 0x23a   :  { %v734_v59 = vmul.f32 %v1906_v38, %v732_v1  ;;  %1907 = vrcp.f32 %v755_v0  ;;  %vm739_vm6 = vweird.f32 %v1906_v38  ;;  %v767_v31 = vand.u32 2147483648, %v755_v0 }
 0x23b   :  { %vm740_vm8 = vmor %vm738_vm7, %vm739_vm6  ;;  %vm761_vm11 = vweird.f32 %v755_v0 }
 0x23c   :  { %v735_v50 = vsub.f32 1.0, %v734_v59  ;;  %v765_v59 = vand.u32 2147483647, %v755_v0  ;;  %v768_v57 = vor.u32 1.1754944e-38, %v767_v31 }
 0x23e   :  { %v736_v23 = vmul.f32 %v1906_v38, %v735_v50  ;;  %v2992_v50 = vsel %vm2373_vm3, %v2331_v62, %v2406_v55  ;;  %vm766_vm13 = vcmp.eq.f32.partialorder %v765_v59, 8.507059e+37 }
 0x240   :  { %v1908_v45 = vpop.eup %1907  ;;  %v737_v14 = vadd.f32 %v1906_v38, %v736_v23 }
 0x241   :  { %v757_v47 = vmul.f32 %v1908_v45, %v755_v0  ;;  %vm762_vm10 = vweird.f32 %v1908_v45 }
 0x242   :  { %v741_v54 = vsel %vm740_vm8, %v1906_v38, %v737_v14  ;;  %vm763_vm12 = vmor %vm761_vm11, %vm762_vm10 }
 0x243   :  { %v746_v46 = vsel %vm743_vm9, %v745_v60, %v741_v54  ;;  %v758_v40 = vsub.f32 1.0, %v757_v47 }
 0x244   :  { %v748_v9 = vmul.f32 %v746_v46, %v703_v30 }
 0x245   :  { %v759_v10 = vmul.f32 %v1908_v45, %v758_v40 }
 0x246   :  { %v749_v1 = vadd.f32 %v748_v9, %v2992_v50  ;;  %v2993_v9 = vsel %vm2358_vm2, %v2363_v36, %v2366_v43 }
 0x247   :  { %v760_v23 = vadd.f32 %v1908_v45, %v759_v10 }
 0x248   :  { %1909 = vtanh.f32 %v749_v1 }
 0x249   :  { %v764_v38 = vsel %vm763_vm12, %v1908_v45, %v760_v23 }
 0x24a   :  { %v769_v41 = vsel %vm766_vm13, %v768_v57, %v764_v38 }
 0x24b   :  { %v771_v51 = vsub.f32 1.0, %v769_v41  ;;  %v773_v47 = vmul.f32 %v769_v41, %v2548_v16 }
 0x24e   :  { %v1910_v14 = vpop.eup %1909 }
 0x24f   :  { %v772_v60 = vmul.f32 %v1910_v14, %v771_v51 }
 0x251   :  { %v2582_v30 = vadd.f32 %v773_v47, %v772_v60 }
 0x253   :  { %v2586_v54 = vpack.c.bf16 %v2582_v30, %v2582_v30 }
 0x255   :  { %784 = vmatmul.bf16.vlgmr.msrb.gmra.mxu3 %v2586_v54  ;;  %797 = vmatmul.bf16.vlgmr.msrb.gmra.mxu0 %v2586_v54  ;;  %v1229_v0 = vunpack.c.l.b16 %v2586_v54 }
 0x256   :  { %810 = vmatmul.bf16.vlgmr.msra.gmra.mxu1 %v2586_v54  ;;  %1095 = vmatpush.bf16.msrb.mxu3 %v2110_v6 }
 0x257   :  { %v1230_v45 = vpack.c.b16 %v1229_v0, %v1229_v0  ;;  %1108 = vmatpush.bf16.msrb.mxu0 %v2144_v33 }
 0x259   :  { %1231 = vrot.lane.b32.xlu1 %v1230_v45, %s2062_s4 }
 0x25a   :  { %1096 = vmatpush.bf16.msrb.mxu3 %v2121_v12 }
 0x25b   :  { %1109 = vmatpush.bf16.msrb.mxu0 %v2155_v42 }
 0x25e   :  { %1097 = vmatpush.bf16.msrb.mxu3 %v2130_v21 }
 0x25f   :  { %1110 = vmatpush.bf16.msrb.mxu0 %v2170_v52 }
 0x262   :  { %1098 = vmatpush.bf16.msrb.mxu3 %v2140_v29 }
 0x263   :  { %1111 = vmatpush.bf16.msrb.mxu0 %v2181_v61 }
 0x266   :  { %1099 = vmatpush.bf16.msrb.mxu3 %v2153_v39 }
 0x267   :  { %1112 = vmatpush.bf16.msrb.mxu0 %v2196_v5 }
 0x26a   :  { %1100 = vmatpush.bf16.msrb.mxu3 %v2166_v49 }
 0x26b   :  { %1113 = vmatpush.bf16.msrb.mxu0 %v2209_v15 }
 0x26e   :  { %1101 = vmatpush.bf16.msrb.mxu3 %v2179_v58 }
 0x26f   :  { %1114 = vmatpush.bf16.msrb.mxu0 %v2220_v22 }
 0x272   :  { %1102 = vmatpush.bf16.msrb.mxu3 %v2192_v4 }
 0x273   :  { %1115 = vmatpush.bf16.msrb.mxu0 %v2231_v27 }
 0x2d2   :  { %v798_v16 = vpop.f32.mrf.mxu0 }
 0x2d3   :  { %v811_v46 = vpop.f32.mrf.mxu1 }
 0x2d4   :  { %v812_v40 = vadd.f32 %v811_v46, %v2463_v26 }
 0x2d6   :  { %v847_v31 = vadd.f32 %v2993_v9, %v812_v40 }
 0x2d8   :  { %v1780_v10 = vmul.f32 -1.442695, %v847_v31  ;;  %v785_v59 = vpop.f32.mrf.mxu3 }
 0x2d9   :  { %v786_v50 = vadd.f32 %v785_v59, %v2344_v13 }
 0x2da   :  { %1911 = vpow2.f32 %v1780_v10  ;;  %v800_v1 = vpop.f32.mrf.mxu0 }
 0x2db   :  { %v824_v23 = vadd.f32 %v2349_v17, %v786_v50  ;;  %v813_v57 = vpop.f32.mrf.mxu1 }
 0x2dc   :  { %v799_v57 = vadd.f32 %v798_v16, %v2493_v3 }
 0x2dd   :  { %v1779_v38 = vmul.f32 -1.442695, %v824_v23 }
 0x2df   :  { %1913 = vpow2.f32 %v1779_v38 }
 0x2e0   :  { %v1912_v41 = vpop.eup %1911  ;;  %v787_v51 = vpop.f32.mrf.mxu3 }
 0x2e1   :  { %v851_v14 = vadd.f32 1.0, %v1912_v41 }
 0x2e3   :  { %1915 = vrcp.f32 %v851_v14  ;;  %vm857_vm5 = vweird.f32 %v851_v14 }
 0x2e5   :  { %v1914_v60 = vpop.eup %1913 }
 0x2e6   :  { %v828_v47 = vadd.f32 1.0, %v1914_v60  ;;  %v863_v60 = vand.u32 2147483648, %v851_v14 }
 0x2e8   :  { %1917 = vrcp.f32 %v828_v47  ;;  %v840_v10 = vand.u32 2147483648, %v828_v47  ;;  %v838_v17 = vand.u32 2147483647, %v828_v47  ;;  %vm834_vm15 = vweird.f32 %v828_v47 }
 0x2e9   :  { %v1916_v0 = vpop.eup %1915 }
 0x2ea   :  { %v853_v45 = vmul.f32 %v1916_v0, %v851_v14  ;;  %v841_v23 = vor.u32 1.1754944e-38, %v840_v10  ;;  %vm839_vm1 = vcmp.eq.f32.partialorder %v838_v17, 8.507059e+37  ;;  %vm858_vm4 = vweird.f32 %v1916_v0 }
 0x2eb   :  { %vm859_vm6 = vmor %vm857_vm5, %vm858_vm4  ;;  %v864_v10 = vor.u32 1.1754944e-38, %v863_v60 }
 0x2ec   :  { %v854_v9 = vsub.f32 1.0, %v853_v45  ;;  %v861_v45 = vand.u32 2147483647, %v851_v14 }
 0x2ee   :  { %v1918_v46 = vpop.eup %1917  ;;  %v855_v50 = vmul.f32 %v1916_v0, %v854_v9  ;;  %vm862_vm7 = vcmp.eq.f32.partialorder %v861_v45, 8.507059e+37 }
 0x2ef   :  { %v830_v40 = vmul.f32 %v1918_v46, %v828_v47  ;;  %vm835_vm14 = vweird.f32 %v1918_v46 }
 0x2f0   :  { %vm836_vm0 = vmor %vm834_vm15, %vm835_vm14  ;;  %v856_v41 = vadd.f32 %v1916_v0, %v855_v50 }
 0x2f1   :  { %v831_v31 = vsub.f32 1.0, %v830_v40  ;;  %v2994_v40 = vld [vmem:[#allocation17_spill] sm:$0xff] }
 0x2f2   :  { %v2995_v9 = vsel %vm2373_vm3, %v2341_v11, %v2994_v40 }
 0x2f3   :  { %v832_v59 = vmul.f32 %v1918_v46, %v831_v31  ;;  %v860_v31 = vsel %vm859_vm6, %v1916_v0, %v856_v41  ;;  %v2996_v41 = vsel %vm2358_vm2, %v2366_v43, %v2363_v36  ;;  %v2667_v43 = vld [vmem:[%s2948_s5] sm:$0xff] }
 0x2f4   :  { %v865_v16 = vsel %vm862_vm7, %v864_v10, %v860_v31  ;;  %v2659_v31 = vld [vmem:[%s2948_s5 + $0x8] sm:$0xff]  ;;  %v2997_v10 = vld [vmem:[#allocation16_spill] sm:$0xff] }
 0x2f5   :  { %v833_v1 = vadd.f32 %v1918_v46, %v832_v59  ;;  %v869_v50 = vmul.f32 %v865_v16, %v2582_v30  ;;  %v2638_v30 = vld [vmem:[%s2948_s5 + $0x18] sm:$0xff] }
 0x2f6   :  { %994 = vmatpush.bf16.msrb.mxu1 %v2638_v30 }
 0x2f7   :  { %v837_v38 = vsel %vm836_vm0, %v1918_v46, %v833_v1  ;;  %v867_v46 = vsub.f32 1.0, %v865_v16  ;;  %vm986_vm0 = vcmask 523264  }
 0x2f8   :  { %v842_v51 = vsel %vm839_vm1, %v841_v23, %v837_v38  ;;  %v2646_v38 = vld [vmem:[%s2948_s5 + $0x10] sm:$0xff] }
 0x2f9   :  { %v844_v32 = vmul.f32 %v842_v51, %v799_v57 }
 0x2fa   :  { %995 = vmatpush.bf16.msrb.mxu1 %v2646_v38 }
 0x2fb   :  { %v845_v47 = vadd.f32 %v844_v32, %v2995_v9 }
 0x2fd   :  { %1919 = vtanh.f32 %v845_v47 }
 0x2fe   :  { %996 = vmatpush.bf16.msrb.mxu1 %v2659_v31 }
 0x302   :  { %997 = vmatpush.bf16.msrb.mxu1 %v2667_v43 }
 0x303   :  { %v1920_v59 = vpop.eup %1919 }
 0x304   :  { %v868_v17 = vmul.f32 %v1920_v59, %v867_v46  ;;  %v2672_v59 = vld [vmem:[%s2948_s5 + $0x38] sm:$0xff] }
 0x305   :  { %1039 = vmatpush.bf16.msra.mxu2 %v2672_v59 }
 0x306   :  { %v2624_v1 = vadd.f32 %v869_v50, %v868_v17  ;;  %1060 = vmatpush.bf16.msra.mxu1 %v2672_v59 }
 0x308   :  { %v2628_v14 = vpack.c.bf16 %v2624_v1, %v2624_v1 }
 0x30a   :  { %880 = vmatmul.bf16.vlgmr.msrb.gmra.mxu2 %v2628_v14  ;;  %893 = vmatmul.bf16.vlgmr.msra.gmra.mxu3 %v2628_v14  ;;  %v1049_v32 = vunpack.c.l.b16 %v2628_v14 }
 0x30b   :  { %906 = vmatmul.bf16.vlgmr.msra.gmra.mxu0 %v2628_v14  ;;  %1240 = vmatpush.bf16.msra.mxu3 %v2672_v59 }
 0x30c   :  { %v1050_v0 = vpack.c.b16 %v1049_v32, %v1049_v32  ;;  %1256 = vmatpush.bf16.msra.mxu0 %v2638_v30 }
 0x30e   :  { %1051 = vrot.lane.b32.xlu0 %v1050_v0, %s2062_s4 }
 0x310   :  { %1257 = vmatpush.bf16.msra.mxu0 %v2646_v38 }
 0x314   :  { %1258 = vmatpush.bf16.msra.mxu0 %v2659_v31 }
 0x318   :  { %1259 = vmatpush.bf16.msra.mxu0 %v2667_v43 }
 0x388   :  { %v907_v23 = vpop.f32.mrf.mxu0 }
 0x389   :  { %v908_v57 = vadd.f32 %v907_v23, %v2463_v26  ;;  %v2682_v23 = vld [vmem:[%s2948_s5 + $0x30] sm:$0xff] }
 0x38a   :  { %1061 = vmatpush.bf16.msra.mxu1 %v2682_v23  ;;  %1241 = vmatpush.bf16.msra.mxu3 %v2682_v23 }
 0x38b   :  { %v937_v51 = vadd.f32 %v2996_v41, %v908_v57  ;;  %v2688_v57 = vld [vmem:[%s2948_s5 + $0x28] sm:$0xff]  ;;  %1040 = vmatpush.bf16.msra.mxu2 %v2682_v23 }
 0x38d   :  { %v1782_v60 = vmul.f32 -1.442695, %v937_v51  ;;  %v881_v45 = vpop.f32.mrf.mxu2  ;;  %v894_v9 = vpop.f32.mrf.mxu3 }
 0x38e   :  { %v882_v47 = vadd.f32 %v881_v45, %v2344_v13  ;;  %1062 = vmatpush.bf16.msra.mxu1 %v2688_v57  ;;  %1242 = vmatpush.bf16.msra.mxu3 %v2688_v57  ;;  %v2698_v45 = vld [vmem:[%s2948_s5 + $0x20] sm:$0xff]  ;;  %v895_v28 = vadd.f32 %v894_v9, %v2493_v3 }
 0x38f   :  { %1921 = vpow2.f32 %v1782_v60  ;;  %1041 = vmatpush.bf16.msra.mxu2 %v2688_v57 }
 0x390   :  { %v914_v16 = vadd.f32 %v2997_v10, %v882_v47  ;;  %v909_v46 = vpop.f32.mrf.mxu0 }
 0x392   :  { %v1781_v36 = vmul.f32 -1.442695, %v914_v16  ;;  %1063 = vmatpush.bf16.msra.mxu1 %v2698_v45  ;;  %1243 = vmatpush.bf16.msra.mxu3 %v2698_v45 }
 0x393   :  { %1042 = vmatpush.bf16.msra.mxu2 %v2698_v45 }
 0x394   :  { %1923 = vpow2.f32 %v1781_v36 }
 0x395   :  { %v1922_v17 = vpop.eup %1921  ;;  %v883_v50 = vpop.f32.mrf.mxu2 }
 0x396   :  { %v896_v32 = vpop.f32.mrf.mxu3  ;;  %v941_v0 = vadd.f32 1.0, %v1922_v17 }
 0x397   :  { %1076 = vmatpush.bf16.msrb.mxu2 %v2638_v30 }
 0x398   :  { %1925 = vrcp.f32 %v941_v0  ;;  %v953_v27 = vand.u32 2147483648, %v941_v0  ;;  %vm947_vm13 = vweird.f32 %v941_v0 }
 0x39a   :  { %v1924_v41 = vpop.eup %1923  ;;  %v954_v9 = vor.u32 1.1754944e-38, %v953_v27 }
 0x39b   :  { %v918_v51 = vadd.f32 1.0, %v1924_v41  ;;  %1077 = vmatpush.bf16.msrb.mxu2 %v2646_v38 }
 0x39d   :  { %1927 = vrcp.f32 %v918_v51  ;;  %v930_v17 = vand.u32 2147483648, %v918_v51  ;;  %v928_v32 = vand.u32 2147483647, %v918_v51  ;;  %vm924_vm9 = vweird.f32 %v918_v51 }
 0x39e   :  { %v1926_v60 = vpop.eup %1925 }
 0x39f   :  { %v943_v47 = vmul.f32 %v1926_v60, %v941_v0  ;;  %v931_v19 = vor.u32 1.1754944e-38, %v930_v17  ;;  %1078 = vmatpush.bf16.msrb.mxu2 %v2659_v31  ;;  %vm929_vm11 = vcmp.eq.f32.partialorder %v928_v32, 8.507059e+37  ;;  %vm948_vm12 = vweird.f32 %v1926_v60  ;;  %v2781_v32 = vld [vmem:[%s2949_s6] ss:$0 sm:$0xff]  ;;  %s2063_s6 = smov [#allocation8]  }
 0x3a0   :  { %vm949_vm14 = vmor %vm947_vm13, %vm948_vm12  ;;  %s1640_s23 = sshll.u32 %s2063_s6, 4  ;;  %s1641_s23 = int_to_ptr.vmem [resolvable:$true] %s1640_s23 }
 0x3a1   :  { %v944_v46 = vsub.f32 1.0, %v943_v47 }
 0x3a3   :  { %v1928_v10 = vpop.eup %1927  ;;  %v945_v41 = vmul.f32 %v1926_v60, %v944_v46  ;;  %1079 = vmatpush.bf16.msrb.mxu2 %v2667_v43 }
 0x3a4   :  { %v920_v16 = vmul.f32 %v1928_v10, %v918_v51  ;;  %vm925_vm8 = vweird.f32 %v1928_v10  ;;  %v2998_v51 = vsel %vm2373_vm3, %v2994_v40, %v2341_v11  ;;  %v1232_v11 = vpop.permute.xlu1 %1231  ;;  %v1052_v40 = vpop.permute.xlu0 %1051 }
 0x3a5   :  { %vm926_vm10 = vmor %vm924_vm9, %vm925_vm8 }
 0x3a6   :  { %v921_v36 = vsub.f32 1.0, %v920_v16  ;;  %v946_v16 = vadd.f32 %v1926_v60, %v945_v41 }
 0x3a8   :  { %v922_v50 = vmul.f32 %v1928_v10, %v921_v36  ;;  %v951_v36 = vand.u32 2147483647, %v941_v0  ;;  %v950_v17 = vsel %vm949_vm14, %v1926_v60, %v946_v16 }
 0x3aa   :  { %v923_v48 = vadd.f32 %v1928_v10, %v922_v50  ;;  %vm952_vm15 = vcmp.eq.f32.partialorder %v951_v36, 8.507059e+37 }
 0x3ac   :  { %v927_v8 = vsel %vm926_vm10, %v1928_v10, %v923_v48  ;;  %v955_v48 = vsel %vm952_vm15, %v954_v9, %v950_v17  ;;  %v3000_v9 = vld [vmem:[#allocation14_spill] sm:$0xff] }
 0x3ad   :  { %v932_v47 = vsel %vm929_vm11, %v931_v19, %v927_v8  ;;  %v957_v8 = vsub.f32 1.0, %v955_v48  ;;  %vm350_vm1 = vcmp.ge.s32.totalorder %v3000_v9, 8  ;;  %vm351_vm4 = vcmp.lt.s32.totalorder %v3000_v9, 16 }
 0x3ae   :  { %v934_v22 = vmul.f32 %v932_v47, %v895_v28  ;;  %v959_v28 = vmul.f32 %v955_v48, %v2624_v1  ;;  %vm2793_vm5 = vmand %vm350_vm1, %vm351_vm4 }
 0x3b0   :  { %v935_v46 = vadd.f32 %v934_v22, %v2998_v51 }
 0x3b2   :  { %1929 = vtanh.f32 %v935_v46 }
 0x3b8   :  { %v1930_v19 = vpop.eup %1929 }
 0x3b9   :  { %v958_v10 = vmul.f32 %v1930_v19, %v957_v8 }
 0x3bb   :  { %v2714_v0 = vadd.f32 %v959_v28, %v958_v10 }
 0x3bd   :  { %v961_v50 = vpack.c.bf16 %v2714_v0, %v2714_v0 }
 0x3bf   :  { %1799 = vmatmul.msk.bf16.vlgmr.msrb.gmra.mxu1 %vm986_vm0, %v961_v50  ;;  %1103 = vmatmul.bf16.vlgmr.msrb.gmra.mxu3 %v961_v50  ;;  %v1004_v22 = vunpack.c.l.b16 %v961_v50 }
 0x3c0   :  { %1116 = vmatmul.bf16.vlgmr.msrb.gmra.mxu0 %v961_v50  ;;  %1121 = vmatpush.bf16.msrb.mxu1 %v2127_v18 }
 0x3c1   :  { %v1005_v27 = vpack.c.b16 %v1004_v22, %v1004_v22  ;;  %1301 = vmatpush.bf16.msrb.mxu3 %v2127_v18  ;;  %1378 = vmatpush.bf16.msrb.mxu0 %v2638_v30 }
 0x3c3   :  { %1006 = vrot.lane.b32.xlu0 %v1005_v27, %s2062_s4 }
 0x3c4   :  { %1122 = vmatpush.bf16.msrb.mxu1 %v2137_v25 }
 0x3c5   :  { %1302 = vmatpush.bf16.msrb.mxu3 %v2137_v25  ;;  %1379 = vmatpush.bf16.msrb.mxu0 %v2646_v38 }
 0x3c8   :  { %1123 = vmatpush.bf16.msrb.mxu1 %v2148_v34 }
 0x3c9   :  { %1303 = vmatpush.bf16.msrb.mxu3 %v2148_v34  ;;  %1380 = vmatpush.bf16.msrb.mxu0 %v2659_v31 }
 0x3cc   :  { %1124 = vmatpush.bf16.msrb.mxu1 %v2161_v44 }
 0x3cd   :  { %1304 = vmatpush.bf16.msrb.mxu3 %v2161_v44  ;;  %1381 = vmatpush.bf16.msrb.mxu0 %v2667_v43 }
 0x3cf   :  { %1817 = vmatmul.msk.bf16.vlgmr.msra.gmra.mxu1 %vm986_vm0, %v1052_v40  ;;  %1823 = vmatmul.msk.bf16.vlgmr.msra.gmra.mxu3 %vm986_vm0, %v1232_v11 }
 0x3d0   :  { %1824 = vmatmul.msk.bf16.vlgmr.msra.gmra.mxu0 %vm986_vm0, %v2586_v54  ;;  %1125 = vmatpush.bf16.msrb.mxu1 %v2174_v53 }
 0x3d1   :  { %1305 = vmatpush.bf16.msrb.mxu3 %v2174_v53  ;;  %1399 = vmatpush.bf16.msra.mxu0 %v2672_v59 }
 0x3d4   :  { %1126 = vmatpush.bf16.msrb.mxu1 %v2187_v63 }
 0x3d5   :  { %1306 = vmatpush.bf16.msrb.mxu3 %v2187_v63  ;;  %1400 = vmatpush.bf16.msra.mxu0 %v2682_v23 }
 0x3d8   :  { %1127 = vmatpush.bf16.msrb.mxu1 %v2200_v7 }
 0x3d9   :  { %1307 = vmatpush.bf16.msrb.mxu3 %v2200_v7  ;;  %1401 = vmatpush.bf16.msra.mxu0 %v2688_v57 }
 0x3dc   :  { %1128 = vmatpush.bf16.msrb.mxu1 %v2212_v20 }
 0x3dd   :  { %1308 = vmatpush.bf16.msrb.mxu3 %v2212_v20  ;;  %1402 = vmatpush.bf16.msra.mxu0 %v2698_v45 }
 0x3df   :  { %1129 = vmatmul.bf16.vlgmr.msrb.gmra.mxu1 %v961_v50 }
 0x3e0   :  { %1275 = vmatpush.bf16.msra.mxu1 %v2110_v6 }
 0x3e1   :  { %1455 = vmatpush.bf16.msra.mxu3 %v2110_v6 }
 0x3e4   :  { %1276 = vmatpush.bf16.msra.mxu1 %v2121_v12 }
 0x3e5   :  { %1456 = vmatpush.bf16.msra.mxu3 %v2121_v12 }
 0x3e8   :  { %1277 = vmatpush.bf16.msra.mxu1 %v2130_v21 }
 0x3e9   :  { %1457 = vmatpush.bf16.msra.mxu3 %v2130_v21 }
 0x3ec   :  { %1278 = vmatpush.bf16.msra.mxu1 %v2140_v29 }
 0x3ed   :  { %1458 = vmatpush.bf16.msra.mxu3 %v2140_v29 }
 0x3f0   :  { %1279 = vmatpush.bf16.msra.mxu1 %v2153_v39 }
 0x3f1   :  { %1459 = vmatpush.bf16.msra.mxu3 %v2153_v39 }
 0x3f4   :  { %1280 = vmatpush.bf16.msra.mxu1 %v2166_v49 }
 0x3f5   :  { %1460 = vmatpush.bf16.msra.mxu3 %v2166_v49 }
 0x3f8   :  { %1281 = vmatpush.bf16.msra.mxu1 %v2179_v58 }
 0x3f9   :  { %1461 = vmatpush.bf16.msra.mxu3 %v2179_v58  ;;  %v2999_v58 = vld [vmem:[#allocation18_spill] sm:$0xff] }
 0x3fc   :  { %1282 = vmatpush.bf16.msra.mxu1 %v2192_v4 }
 0x3fd   :  { %1462 = vmatpush.bf16.msra.mxu3 %v2192_v4 }
 0x400   :  { %1420 = vmatpush.bf16.msrb.mxu1 %v2672_v59 }
 0x404   :  { %1421 = vmatpush.bf16.msrb.mxu1 %v2682_v23 }
 0x408   :  { %1422 = vmatpush.bf16.msrb.mxu1 %v2688_v57 }
 0x40c   :  { %1423 = vmatpush.bf16.msrb.mxu1 %v2698_v45 }
 0x435   :  { %v1007_v6 = vpop.permute.xlu0 %1006 }
 0x436   :  { %1816 = vmatmul.msk.bf16.vlgmr.msra.gmra.mxu2 %vm986_vm0, %v1007_v6 }
 0x437   :  { %1198 = vmatpush.bf16.msra.mxu2 %v2638_v30 }
 0x43b   :  { %1199 = vmatpush.bf16.msra.mxu2 %v2646_v38 }
 0x43c   :  { %v999_v12 = vpop.f32.mrf.mxu1 }
 0x43d   :  { %v1117_v21 = vpop.f32.mrf.mxu0 }
 0x43f   :  { %1200 = vmatpush.bf16.msra.mxu2 %v2659_v31 }
 0x442   :  { %v1104_v29 = vpop.f32.mrf.mxu3 }
 0x443   :  { %v1105_v39 = vadd.f32 %v1104_v29, %v2344_v13  ;;  %1201 = vmatpush.bf16.msra.mxu2 %v2667_v43 }
 0x444   :  { %v1001_v49 = vpop.f32.mrf.mxu1 }
 0x445   :  { %v1143_v4 = vadd.f32 %v2999_v58, %v1105_v39  ;;  %v1119_v54 = vpop.f32.mrf.mxu0  ;;  %v3003_v58 = vsel %vm2358_vm2, %v2402_v24, %v2327_v56 }
 0x446   :  { %1818 = vmatmul.msk.bf16.vlgmr.msrb.gmra.mxu2 %vm986_vm0, %v2628_v14 }
 0x447   :  { %v1819_v1 = vmul.f32 -1.442695, %v1143_v4  ;;  %1219 = vmatpush.bf16.msrb.mxu2 %v2672_v59 }
 0x449   :  { %1931 = vpow2.f32 %v1819_v1  ;;  %v1118_v1 = vadd.f32 %v1117_v21, %v2493_v3 }
 0x44a   :  { %v1106_v60 = vpop.f32.mrf.mxu3 }
 0x44b   :  { %1220 = vmatpush.bf16.msrb.mxu2 %v2682_v23 }
 0x44c   :  { %v1065_v41 = vpop.f32.mrf.mxu1 }
 0x44d   :  { %v1066_v47 = vadd.f32 %v1065_v41, %v999_v12  ;;  %v2784_v16 = vpop.f32.mrf.mxu0 }
 0x44f   :  { %v1932_v36 = vpop.eup %1931  ;;  %v1090_v51 = vadd.f32 %v2781_v32, %v1066_v47  ;;  %1221 = vmatpush.bf16.msrb.mxu2 %v2688_v57 }
 0x450   :  { %v1147_v14 = vadd.f32 1.0, %v1932_v36 }
 0x451   :  { %v1091_v46 = vmul.f32 1.442695, %v1090_v51 }
 0x452   :  { %1933 = vrcp.f32 %v1147_v14  ;;  %v2788_v17 = vpop.f32.mrf.mxu3  ;;  %v1159_v40 = vand.u32 2147483648, %v1147_v14  ;;  %v1157_v29 = vand.u32 2147483647, %v1147_v14  ;;  %vm1153_vm7 = vweird.f32 %v1147_v14 }
 0x453   :  { %1935 = vpow2.f32 %v1091_v46  ;;  %1222 = vmatpush.bf16.msrb.mxu2 %v2698_v45 }
 0x454   :  { %v1067_v48 = vpop.f32.mrf.mxu1  ;;  %v1160_v54 = vor.u32 1.1754944e-38, %v1159_v40  ;;  %vm1158_vm9 = vcmp.eq.f32.partialorder %v1157_v29, 8.507059e+37 }
 0x455   :  { %v1263_v8 = vpop.f32.mrf.mxu0 }
 0x458   :  { %v1934_v10 = vpop.eup %1933 }
 0x459   :  { %v1936_v28 = vpop.eup %1935  ;;  %v1149_v50 = vmul.f32 %v1934_v10, %v1147_v14  ;;  %vm1154_vm6 = vweird.f32 %v1934_v10  ;;  %v3004_v14 = vsel %vm2373_vm3, %v2406_v55, %v2331_v62 }
 0x45a   :  { %v1093_v22 = vsel %vm2793_vm5, %v1936_v28, %v1090_v51  ;;  %v1247_v27 = vpop.f32.mrf.mxu3  ;;  %vm1155_vm8 = vmor %vm1153_vm7, %vm1154_vm6 }
 0x45b   :  { %v1150_v11 = vsub.f32 1.0, %v1149_v50  ;;  %1094 = vst [vmem:[#allocation8 + $0x20] sm:$0xff] %v1093_v22 }
 0x45c   :  { %v1130_v6 = vpop.f32.mrf.mxu1 }
 0x45d   :  { %v1151_v12 = vmul.f32 %v1934_v10, %v1150_v11  ;;  %v1131_v39 = vadd.f32 %v1130_v6, %v2463_v26 }
 0x45f   :  { %v1152_v49 = vadd.f32 %v1934_v10, %v1151_v12  ;;  %v1166_v4 = vadd.f32 %v3003_v58, %v1131_v39 }
 0x461   :  { %v1156_v60 = vsel %vm1155_vm8, %v1934_v10, %v1152_v49  ;;  %v1820_v41 = vmul.f32 -1.442695, %v1166_v4 }
 0x462   :  { %v1161_v47 = vsel %vm1158_vm9, %v1160_v54, %v1156_v60 }
 0x463   :  { %v1163_v36 = vmul.f32 %v1161_v47, %v1118_v1  ;;  %1937 = vpow2.f32 %v1820_v41 }
 0x464   :  { %v1132_v51 = vpop.f32.mrf.mxu1 }
 0x465   :  { %v1164_v46 = vadd.f32 %v1163_v36, %v3004_v14  ;;  %v3007_v51 = vld [vmem:[#allocation19_spill] sm:$0xff] }
 0x469   :  { %v1938_v9 = vpop.eup %1937 }
 0x46a   :  { %v1170_v56 = vadd.f32 1.0, %v1938_v9 }
 0x46c   :  { %1939 = vrcp.f32 %v1170_v56  ;;  %v1182_v21 = vand.u32 2147483648, %v1170_v56  ;;  %v1180_v28 = vand.u32 2147483647, %v1170_v56  ;;  %vm1176_vm11 = vweird.f32 %v1170_v56 }
 0x46d   :  { %1941 = vtanh.f32 %v1164_v46 }
 0x46e   :  { %v1183_v22 = vor.u32 1.1754944e-38, %v1182_v21  ;;  %vm1181_vm13 = vcmp.eq.f32.partialorder %v1180_v28, 8.507059e+37  ;;  %v3008_v21 = vld [vmem:[#allocation21_spill] sm:$0xff] }
 0x472   :  { %v1940_v24 = vpop.eup %1939 }
 0x473   :  { %v1172_v48 = vmul.f32 %v1940_v24, %v1170_v56  ;;  %vm1177_vm10 = vweird.f32 %v1940_v24  ;;  %v1942_v55 = vpop.eup %1941 }
 0x474   :  { %vm1178_vm12 = vmor %vm1176_vm11, %vm1177_vm10 }
 0x475   :  { %v1173_v8 = vsub.f32 1.0, %v1172_v48 }
 0x477   :  { %v1174_v10 = vmul.f32 %v1940_v24, %v1173_v8 }
 0x479   :  { %v1175_v50 = vadd.f32 %v1940_v24, %v1174_v10  ;;  %v3009_v10 = vld [vmem:[#allocation20_spill] sm:$0xff] }
 0x47a   :  { %v3010_v28 = vsel %vm2358_vm2, %v3008_v21, %v3009_v10 }
 0x47b   :  { %v1179_v27 = vsel %vm1178_vm12, %v1940_v24, %v1175_v50 }
 0x47c   :  { %v1184_v11 = vsel %vm1181_vm13, %v1183_v22, %v1179_v27 }
 0x47d   :  { %v1186_v62 = vsub.f32 1.0, %v1184_v11  ;;  %v1188_v6 = vmul.f32 %v1184_v11, %v2714_v0  ;;  %v1589_v0 = vunpack.c.l.b16 %v2504_v37 }
 0x47f   :  { %v1187_v40 = vmul.f32 %v1942_v55, %v1186_v62  ;;  %v1590_v58 = vpack.c.b16 %v1589_v0, %v1589_v0 }
 0x481   :  { %v2812_v12 = vadd.f32 %v1188_v6, %v1187_v40  ;;  %v3011_v6 = vld [vmem:[#allocation28_spill] sm:$0xff] }
 0x483   :  { %v1190_v29 = vpack.c.bf16 %v2812_v12, %v2812_v12 }
 0x485   :  { %1821 = vmatmul.msk.bf16.vlgmr.msra.gmra.mxu2 %vm986_vm0, %v1190_v29  ;;  %1283 = vmatmul.bf16.vlgmr.msra.gmra.mxu1 %v1190_v29  ;;  %v1208_v39 = vunpack.c.l.b16 %v1190_v29 }
 0x486   :  { %1309 = vmatmul.bf16.vlgmr.msrb.gmra.mxu3 %v1190_v29  ;;  %1288 = vmatpush.bf16.msra.mxu2 %v2144_v33 }
 0x487   :  { %v1209_v49 = vpack.c.b16 %v1208_v39, %v1208_v39  ;;  %1481 = vmatpush.bf16.msra.mxu1 %v2127_v18  ;;  %1600 = vmatpush.bf16.msrb.mxu3 %v2672_v59  ;;  %v1412_v18 = vpop.permute.xlu2 %1411 }
 0x489   :  { %1210 = vrot.lane.b32.xlu1 %v1209_v49, %s2062_s4 }
 0x48a   :  { %1289 = vmatpush.bf16.msra.mxu2 %v2155_v42 }
 0x48b   :  { %1482 = vmatpush.bf16.msra.mxu1 %v2137_v25  ;;  %1601 = vmatpush.bf16.msrb.mxu3 %v2682_v23  ;;  %v3005_v25 = vld [vmem:[#allocation12_spill] sm:$0xff] }
 0x48e   :  { %1290 = vmatpush.bf16.msra.mxu2 %v2170_v52 }
 0x48f   :  { %1483 = vmatpush.bf16.msra.mxu1 %v2148_v34  ;;  %1602 = vmatpush.bf16.msrb.mxu3 %v2688_v57  ;;  %v3006_v34 = vld [vmem:[#allocation13_spill] sm:$0xff] }
 0x491   :  { %1591 = vrot.lane.b32.xlu1 %v1590_v58, %s2062_s4 }
 0x492   :  { %1291 = vmatpush.bf16.msra.mxu2 %v2181_v61 }
 0x493   :  { %1484 = vmatpush.bf16.msra.mxu1 %v2161_v44  ;;  %1603 = vmatpush.bf16.msrb.mxu3 %v2698_v45 }
 0x495   :  { %1829 = vmatmul.msk.bf16.vlgmr.msrb.gmra.mxu1 %vm986_vm0, %v1412_v18 }
 0x496   :  { %1292 = vmatpush.bf16.msra.mxu2 %v2196_v5 }
 0x497   :  { %1485 = vmatpush.bf16.msra.mxu1 %v2174_v53 }
 0x49a   :  { %1293 = vmatpush.bf16.msra.mxu2 %v2209_v15 }
 0x49b   :  { %1486 = vmatpush.bf16.msra.mxu1 %v2187_v63 }
 0x49e   :  { %1294 = vmatpush.bf16.msra.mxu2 %v3005_v25 }
 0x49f   :  { %1487 = vmatpush.bf16.msra.mxu1 %v2200_v7 }
 0x4a2   :  { %1295 = vmatpush.bf16.msra.mxu2 %v3006_v34 }
 0x4a3   :  { %1488 = vmatpush.bf16.msra.mxu1 %v2212_v20 }
 0x4b9   :  { %v1044_v44 = vpop.f32.mrf.mxu2 }
 0x4c1   :  { %v1046_v4 = vpop.f32.mrf.mxu2 }
 0x4c9   :  { %v1081_v54 = vpop.f32.mrf.mxu2 }
 0x4ca   :  { %v1082_v1 = vadd.f32 %v1081_v54, %v1044_v44 }
 0x4cc   :  { %v1085_v60 = vadd.f32 %v2781_v32, %v1082_v1 }
 0x4ce   :  { %v1086_v41 = vmul.f32 1.442695, %v1085_v60 }
 0x4d0   :  { %1943 = vpow2.f32 %v1086_v41 }
 0x4d1   :  { %v1083_v53 = vpop.f32.mrf.mxu2 }
 0x4d6   :  { %v1944_v47 = vpop.eup %1943 }
 0x4d7   :  { %v1088_v63 = vsel %vm2793_vm5, %v1944_v47, %v1085_v60 }
 0x4d8   :  { %1089 = vst [vmem:[#allocation8 + $0x18] sm:$0xff] %v1088_v63 }
 0x4fb   :  { %v1211_v36 = vpop.permute.xlu1 %1210 }
 0x4fc   :  { %1822 = vmatmul.msk.bf16.vlgmr.msrb.gmra.mxu2 %vm986_vm0, %v1211_v36 }
 0x4fd   :  { %1436 = vmatpush.bf16.msrb.mxu2 %v2638_v30 }
 0x501   :  { %1437 = vmatpush.bf16.msrb.mxu2 %v2646_v38 }
 0x502   :  { %v1284_v7 = vpop.f32.mrf.mxu1 }
 0x503   :  { %v1285_v20 = vadd.f32 %v1284_v7, %v2344_v13 }
 0x505   :  { %v1323_v14 = vadd.f32 %v3007_v51, %v1285_v20  ;;  %1438 = vmatpush.bf16.msrb.mxu2 %v2659_v31 }
 0x508   :  { %v1203_v46 = vpop.f32.mrf.mxu2 }
 0x509   :  { %v1246_v9 = vadd.f32 %v2788_v17, %v1203_v46  ;;  %v1310_v56 = vpop.f32.mrf.mxu3  ;;  %1439 = vmatpush.bf16.msrb.mxu2 %v2667_v43 }
 0x50a   :  { %v1311_v24 = vadd.f32 %v1310_v56, %v2463_v26  ;;  %v1286_v48 = vpop.f32.mrf.mxu1 }
 0x50b   :  { %v1270_v8 = vadd.f32 %v2781_v32, %v1246_v9 }
 0x50c   :  { %v1346_v50 = vadd.f32 %v3010_v28, %v1311_v24  ;;  %1296 = vmatmul.bf16.vlgmr.msra.gmra.mxu2 %v1190_v29  ;;  %v1825_v29 = vmul.f32 -1.442695, %v1323_v14  ;;  %v3012_v28 = vld [vmem:[#allocation23_spill] sm:$0xff] }
 0x50d   :  { %v1271_v22 = vmul.f32 1.442695, %v1270_v8  ;;  %1558 = vmatpush.bf16.msra.mxu2 %v2638_v30 }
 0x50e   :  { %v1826_v39 = vmul.f32 -1.442695, %v1346_v50  ;;  %v3013_v50 = vld [vmem:[#allocation22_spill] sm:$0xff] }
 0x50f   :  { %1945 = vpow2.f32 %v1271_v22  ;;  %v3014_v22 = vsel %vm2373_vm3, %v3012_v28, %v3013_v50 }
 0x510   :  { %v1205_v17 = vpop.f32.mrf.mxu2  ;;  %1947 = vpow2.f32 %v1825_v29 }
 0x511   :  { %v1312_v27 = vpop.f32.mrf.mxu3  ;;  %1559 = vmatpush.bf16.msra.mxu2 %v2646_v38  ;;  %1949 = vpow2.f32 %v1826_v39 }
 0x512   :  { %v2861_v11 = vpop.f32.mrf.mxu1 }
 0x515   :  { %v1946_v62 = vpop.eup %1945  ;;  %1560 = vmatpush.bf16.msra.mxu2 %v2659_v31 }
 0x516   :  { %v1273_v55 = vsel %vm2793_vm5, %v1946_v62, %v1270_v8  ;;  %v1948_v49 = vpop.eup %1947 }
 0x517   :  { %1274 = vst [vmem:[#allocation8 + $0x28] sm:$0xff] %v1273_v55  ;;  %v1327_v0 = vadd.f32 1.0, %v1948_v49  ;;  %v1950_v58 = vpop.eup %1949 }
 0x518   :  { %v1350_v18 = vadd.f32 1.0, %v1950_v58 }
 0x519   :  { %1561 = vmatpush.bf16.msra.mxu2 %v2667_v43  ;;  %1951 = vrcp.f32 %v1327_v0  ;;  %v1339_v36 = vand.u32 2147483648, %v1327_v0  ;;  %vm1333_vm15 = vweird.f32 %v1327_v0  ;;  %v1337_v20 = vand.u32 2147483647, %v1327_v0 }
 0x51a   :  { %v1427_v40 = vpop.f32.mrf.mxu1  ;;  %1953 = vrcp.f32 %v1350_v18  ;;  %v1362_v8 = vand.u32 2147483648, %v1350_v18  ;;  %vm1356_vm7 = vweird.f32 %v1350_v18  ;;  %v1360_v10 = vand.u32 2147483647, %v1350_v18 }
 0x51b   :  { %v1340_v9 = vor.u32 1.1754944e-38, %v1339_v36  ;;  %vm1338_vm4 = vcmp.eq.f32.partialorder %v1337_v20, 8.507059e+37 }
 0x51c   :  { %1830 = vmatmul.msk.bf16.vlgmr.msrb.gmra.mxu2 %vm986_vm0, %v3011_v6  ;;  %v1363_v62 = vor.u32 1.1754944e-38, %v1362_v8  ;;  %vm1361_vm9 = vcmp.eq.f32.partialorder %v1360_v10, 8.507059e+37 }
 0x51d   :  { %1579 = vmatpush.bf16.msrb.mxu2 %v2672_v59 }
 0x51f   :  { %v1952_v44 = vpop.eup %1951 }
 0x520   :  { %v1329_v4 = vmul.f32 %v1952_v44, %v1327_v0  ;;  %vm1334_vm14 = vweird.f32 %v1952_v44 }
 0x521   :  { %1580 = vmatpush.bf16.msrb.mxu2 %v2682_v23  ;;  %v1954_v23 = vpop.eup %1953  ;;  %vm1335_vm1 = vmor %vm1333_vm15, %vm1334_vm14 }
 0x522   :  { %v1330_v1 = vsub.f32 1.0, %v1329_v4  ;;  %v1352_v60 = vmul.f32 %v1954_v23, %v1350_v18  ;;  %vm1357_vm6 = vweird.f32 %v1954_v23 }
 0x523   :  { %vm1358_vm8 = vmor %vm1356_vm7, %vm1357_vm6 }
 0x524   :  { %v1331_v41 = vmul.f32 %v1952_v44, %v1330_v1  ;;  %v1353_v47 = vsub.f32 1.0, %v1352_v60 }
 0x525   :  { %1581 = vmatpush.bf16.msrb.mxu2 %v2688_v57 }
 0x526   :  { %v1332_v63 = vadd.f32 %v1952_v44, %v1331_v41  ;;  %v1354_v51 = vmul.f32 %v1954_v23, %v1353_v47 }
 0x528   :  { %v1336_v14 = vsel %vm1335_vm1, %v1952_v44, %v1332_v63  ;;  %v1355_v48 = vadd.f32 %v1954_v23, %v1354_v51 }
 0x529   :  { %1582 = vmatpush.bf16.msrb.mxu2 %v2698_v45  ;;  %v1341_v24 = vsel %vm1338_vm4, %v1340_v9, %v1336_v14 }
 0x52a   :  { %v1359_v27 = vsel %vm1358_vm8, %v1954_v23, %v1355_v48  ;;  %v3018_v23 = vld [vmem:[#allocation15_spill] sm:$0xff] }
 0x52b   :  { %v1364_v40 = vsel %vm1361_vm9, %v1363_v62, %v1359_v27 }
 0x52c   :  { %v1366_v6 = vsub.f32 1.0, %v1364_v40  ;;  %v1368_v49 = vmul.f32 %v1364_v40, %v2812_v12  ;;  %v1592_v12 = vpop.permute.xlu1 %1591 }
 0x57f   :  { %v1224_v54 = vpop.f32.mrf.mxu2 }
 0x580   :  { %v1262_v59 = vadd.f32 %v2784_v16, %v1224_v54 }
 0x582   :  { %v1265_v57 = vadd.f32 %v2781_v32, %v1262_v59 }
 0x584   :  { %v1266_v45 = vmul.f32 1.442695, %v1265_v57 }
 0x586   :  { %1955 = vpow2.f32 %v1266_v45 }
 0x587   :  { %v1226_v53 = vpop.f32.mrf.mxu2 }
 0x58c   :  { %v1956_v7 = vpop.eup %1955 }
 0x58d   :  { %v1268_v16 = vsel %vm2793_vm5, %v1956_v7, %v1265_v57 }
 0x58e   :  { %1269 = vst [vmem:[#allocation8 + $0x10] sm:$0xff] %v1268_v16 }
 0x58f   :  { %v1297_v46 = vpop.f32.mrf.mxu2 }
 0x590   :  { %v1298_v56 = vadd.f32 %v1297_v46, %v2493_v3 }
 0x592   :  { %v1343_v21 = vmul.f32 %v1341_v24, %v1298_v56 }
 0x594   :  { %v1344_v17 = vadd.f32 %v1343_v21, %v3014_v22 }
 0x596   :  { %1957 = vtanh.f32 %v1344_v17 }
 0x597   :  { %v1299_v55 = vpop.f32.mrf.mxu2 }
 0x59c   :  { %v1958_v29 = vpop.eup %1957 }
 0x59d   :  { %v1367_v39 = vmul.f32 %v1958_v29, %v1366_v6 }
 0x59f   :  { %v1441_v0 = vpop.f32.mrf.mxu2  ;;  %v2884_v58 = vadd.f32 %v1368_v49, %v1367_v39 }
 0x5a1   :  { %v1370_v18 = vpack.c.bf16 %v2884_v58, %v2884_v58 }
 0x5a3   :  { %1827 = vmatmul.msk.bf16.vlgmr.msrb.gmra.mxu0 %vm986_vm0, %v1370_v18  ;;  %1463 = vmatmul.bf16.vlgmr.msra.gmra.mxu3 %v1370_v18  ;;  %v1388_v44 = vunpack.c.l.b16 %v1370_v18 }
 0x5a4   :  { %1489 = vmatmul.bf16.vlgmr.msra.gmra.mxu1 %v1370_v18  ;;  %1468 = vmatpush.bf16.msrb.mxu0 %v2144_v33 }
 0x5a5   :  { %v1389_v4 = vpack.c.b16 %v1388_v44, %v1388_v44  ;;  %v3019_v44 = vld [vmem:[#allocation27_spill] sm:$0xff] }
 0x5a7   :  { %v1443_v54 = vpop.f32.mrf.mxu2  ;;  %1390 = vrot.lane.b32.xlu2 %v1389_v4, %s2062_s4  ;;  %v3020_v4 = vld [vmem:[#allocation26_spill] sm:$0xff] }
 0x5a8   :  { %1469 = vmatpush.bf16.msrb.mxu0 %v2155_v42  ;;  %v3021_v54 = vsel %vm2373_vm3, %v3019_v44, %v3020_v4 }
 0x5ac   :  { %1470 = vmatpush.bf16.msrb.mxu0 %v2170_v52 }
 0x5b0   :  { %1471 = vmatpush.bf16.msrb.mxu0 %v2181_v61 }
 0x5b3   :  { %1835 = vmatmul.msk.bf16.vlgmr.msrb.gmra.mxu3 %vm986_vm0, %v1592_v12 }
 0x5b4   :  { %1472 = vmatpush.bf16.msrb.mxu0 %v2196_v5 }
 0x5b8   :  { %1473 = vmatpush.bf16.msrb.mxu0 %v2209_v15 }
 0x5bc   :  { %1474 = vmatpush.bf16.msrb.mxu0 %v3005_v25 }
 0x5c0   :  { %1475 = vmatpush.bf16.msrb.mxu0 %v3006_v34 }
 0x601   :  { %v1391_v33 = vpop.permute.xlu2 %1390 }
 0x602   :  { %1828 = vmatmul.msk.bf16.vlgmr.msra.gmra.mxu0 %vm986_vm0, %v1391_v33 }
 0x603   :  { %1616 = vmatpush.bf16.msra.mxu0 %v2638_v30  ;;  %v3015_v30 = vld [vmem:[#allocation25_spill] sm:$0xff] }
 0x607   :  { %1617 = vmatpush.bf16.msra.mxu0 %v2646_v38  ;;  %v3016_v38 = vld [vmem:[#allocation24_spill] sm:$0xff] }
 0x608   :  { %v3017_v25 = vsel %vm2358_vm2, %v3015_v30, %v3016_v38 }
 0x60b   :  { %1618 = vmatpush.bf16.msra.mxu0 %v2659_v31 }
 0x60f   :  { %1619 = vmatpush.bf16.msra.mxu0 %v2667_v43 }
 0x612   :  { %1476 = vmatmul.bf16.vlgmr.msrb.gmra.mxu0 %v1370_v18 }
 0x620   :  { %v1383_v42 = vpop.f32.mrf.mxu0 }
 0x621   :  { %v1426_v52 = vadd.f32 %v2861_v11, %v1383_v42  ;;  %v1490_v61 = vpop.f32.mrf.mxu1 }
 0x622   :  { %v1491_v5 = vadd.f32 %v1490_v61, %v2463_v26  ;;  %1836 = vmatmul.msk.bf16.vlgmr.msra.gmra.mxu0 %vm986_vm0, %v2504_v37 }
 0x623   :  { %v1450_v15 = vadd.f32 %v2781_v32, %v1426_v52 }
 0x624   :  { %v1526_v31 = vadd.f32 %v3017_v25, %v1491_v5 }
 0x625   :  { %v1451_v34 = vmul.f32 1.442695, %v1450_v15 }
 0x626   :  { %v1464_v43 = vpop.f32.mrf.mxu3  ;;  %v1832_v53 = vmul.f32 -1.442695, %v1526_v31 }
 0x627   :  { %1959 = vpow2.f32 %v1451_v34  ;;  %v1465_v59 = vadd.f32 %v1464_v43, %v2344_v13 }
 0x628   :  { %v1385_v11 = vpop.f32.mrf.mxu0 }
 0x629   :  { %v1503_v57 = vadd.f32 %v3018_v23, %v1465_v59  ;;  %v1492_v26 = vpop.f32.mrf.mxu1 }
 0x62b   :  { %v1831_v41 = vmul.f32 -1.442695, %v1503_v57 }
 0x62d   :  { %v1960_v1 = vpop.eup %1959  ;;  %1961 = vpow2.f32 %v1831_v41 }
 0x62e   :  { %v1453_v37 = vsel %vm2793_vm5, %v1960_v1, %v1450_v15  ;;  %v1466_v45 = vpop.f32.mrf.mxu3  ;;  %1963 = vpow2.f32 %v1832_v53 }
 0x62f   :  { %1454 = vst [vmem:[#allocation8 + $0x30] sm:$0xff] %v1453_v37 }
 0x633   :  { %v1962_v47 = vpop.eup %1961 }
 0x634   :  { %v1507_v63 = vadd.f32 1.0, %v1962_v47  ;;  %v1964_v13 = vpop.eup %1963 }
 0x635   :  { %v1530_v36 = vadd.f32 1.0, %v1964_v13 }
 0x636   :  { %v2918_v35 = vpop.f32.mrf.mxu3  ;;  %1965 = vrcp.f32 %v1507_v63  ;;  %v1519_v28 = vand.u32 2147483648, %v1507_v63  ;;  %vm1513_vm10 = vweird.f32 %v1507_v63  ;;  %v1517_v22 = vand.u32 2147483647, %v1507_v63 }
 0x637   :  { %1967 = vrcp.f32 %v1530_v36  ;;  %v1542_v49 = vand.u32 2147483648, %v1530_v36  ;;  %vm1536_vm14 = vweird.f32 %v1530_v36  ;;  %v1540_v18 = vand.u32 2147483647, %v1530_v36 }
 0x638   :  { %v1520_v40 = vor.u32 1.1754944e-38, %v1519_v28  ;;  %vm1518_vm12 = vcmp.eq.f32.partialorder %v1517_v22, 8.507059e+37 }
 0x639   :  { %v1543_v42 = vor.u32 1.1754944e-38, %v1542_v49  ;;  %vm1541_vm1 = vcmp.eq.f32.partialorder %v1540_v18, 8.507059e+37 }
 0x63c   :  { %v1966_v7 = vpop.eup %1965 }
 0x63d   :  { %v1509_v20 = vmul.f32 %v1966_v7, %v1507_v63  ;;  %v1968_v14 = vpop.eup %1967  ;;  %vm1514_vm2 = vweird.f32 %v1966_v7 }
 0x63e   :  { %v1607_v60 = vpop.f32.mrf.mxu3  ;;  %v1532_v24 = vmul.f32 %v1968_v14, %v1530_v36  ;;  %vm1515_vm11 = vmor %vm1513_vm10, %vm1514_vm2  ;;  %vm1537_vm13 = vweird.f32 %v1968_v14 }
 0x63f   :  { %v1510_v9 = vsub.f32 1.0, %v1509_v20  ;;  %vm1538_vm15 = vmor %vm1536_vm14, %vm1537_vm13 }
 0x640   :  { %v1533_v21 = vsub.f32 1.0, %v1532_v24 }
 0x641   :  { %v1511_v48 = vmul.f32 %v1966_v7, %v1510_v9 }
 0x642   :  { %v1534_v17 = vmul.f32 %v1968_v14, %v1533_v21 }
 0x643   :  { %v1512_v10 = vadd.f32 %v1966_v7, %v1511_v48 }
 0x644   :  { %v1535_v39 = vadd.f32 %v1968_v14, %v1534_v17 }
 0x645   :  { %v1516_v62 = vsel %vm1515_vm11, %v1966_v7, %v1512_v10 }
 0x646   :  { %v1521_v29 = vsel %vm1518_vm12, %v1520_v40, %v1516_v62  ;;  %v1539_v33 = vsel %vm1538_vm15, %v1968_v14, %v1535_v39 }
 0x647   :  { %v1544_v52 = vsel %vm1541_vm1, %v1543_v42, %v1539_v33 }
 0x648   :  { %v1546_v61 = vsub.f32 1.0, %v1544_v52  ;;  %v1548_v30 = vmul.f32 %v1544_v52, %v2884_v58 }
 0x67f   :  { %v1404_v51 = vpop.f32.mrf.mxu0 }
 0x680   :  { %v1442_v16 = vadd.f32 %v1441_v0, %v1404_v51 }
 0x682   :  { %v1445_v46 = vadd.f32 %v2781_v32, %v1442_v16 }
 0x684   :  { %v1446_v56 = vmul.f32 1.442695, %v1445_v46 }
 0x686   :  { %1969 = vpow2.f32 %v1446_v56 }
 0x687   :  { %v1406_v8 = vpop.f32.mrf.mxu0 }
 0x68c   :  { %v1970_v50 = vpop.eup %1969 }
 0x68d   :  { %v1448_v27 = vsel %vm2793_vm5, %v1970_v50, %v1445_v46 }
 0x68e   :  { %1449 = vst [vmem:[#allocation8 + $0x8] sm:$0xff] %v1448_v27 }
 0x68f   :  { %v1477_v55 = vpop.f32.mrf.mxu0 }
 0x690   :  { %v1478_v6 = vadd.f32 %v1477_v55, %v2493_v3 }
 0x692   :  { %v1523_v0 = vmul.f32 %v1521_v29, %v1478_v6 }
 0x694   :  { %v1524_v12 = vadd.f32 %v1523_v0, %v3021_v54 }
 0x696   :  { %1971 = vtanh.f32 %v1524_v12 }
 0x697   :  { %v1479_v3 = vpop.f32.mrf.mxu0 }
 0x69c   :  { %v1972_v5 = vpop.eup %1971 }
 0x69d   :  { %v1547_v15 = vmul.f32 %v1972_v5, %v1546_v61 }
 0x69f   :  { %v1549_v38 = vadd.f32 %v1548_v30, %v1547_v15  ;;  %v1621_v25 = vpop.f32.mrf.mxu0 }
 0x6a1   :  { %v1550_v31 = vpack.c.bf16 %v1549_v38, %v1549_v38 }
 0x6a3   :  { %1833 = vmatmul.msk.bf16.vlgmr.msra.gmra.mxu2 %vm986_vm0, %v1550_v31  ;;  %v1568_v2 = vunpack.c.l.b16 %v1550_v31 }
 0x6a5   :  { %v1569_v34 = vpack.c.b16 %v1568_v2, %v1568_v2 }
 0x6a7   :  { %v1623_v43 = vpop.f32.mrf.mxu0  ;;  %1570 = vrot.lane.b32.xlu0 %v1569_v34, %s2062_s4 }
 0x719   :  { %v1571_v59 = vpop.permute.xlu0 %1570 }
 0x71a   :  { %1834 = vmatmul.msk.bf16.vlgmr.msrb.gmra.mxu2 %vm986_vm0, %v1571_v59 }
 0x726   :  { %v1563_v11 = vpop.f32.mrf.mxu2 }
 0x727   :  { %v1606_v23 = vadd.f32 %v2918_v35, %v1563_v11 }
 0x729   :  { %v1630_v57 = vadd.f32 %v2781_v32, %v1606_v23 }
 0x72b   :  { %v1631_v26 = vmul.f32 1.442695, %v1630_v57 }
 0x72d   :  { %1973 = vpow2.f32 %v1631_v26 }
 0x72e   :  { %v1565_v58 = vpop.f32.mrf.mxu2 }
 0x733   :  { %v1974_v1 = vpop.eup %1973 }
 0x734   :  { %v1633_v37 = vsel %vm2793_vm5, %v1974_v1, %v1630_v57 }
 0x735   :  { %1634 = vst [vmem:[#allocation8 + $0x38] sm:$0xff] %v1633_v37 }
 0x79d   :  { %v1584_v45 = vpop.f32.mrf.mxu2 }
 0x79e   :  { %v1622_v60 = vadd.f32 %v1621_v25, %v1584_v45 }
 0x7a0   :  { %v1625_v41 = vadd.f32 %v2781_v32, %v1622_v60 }
 0x7a2   :  { %v1626_v53 = vmul.f32 1.442695, %v1625_v41 }
 0x7a4   :  { %1975 = vpow2.f32 %v1626_v53 }
 0x7a5   :  { %v1586_v47 = vpop.f32.mrf.mxu2 }
 0x7aa   :  { %v1976_v35 = vpop.eup %1975 }
 0x7ab   :  { %v1628_v63 = vsel %vm2793_vm5, %v1976_v35, %v1625_v41 }
 0x7ac   :  { %1629 = vst [vmem:[#allocation8] sm:$0xff] %v1628_v63 }
 0x7ad   :  { %1645 = dma.vmem_to_hbm [thread:$0]  %s1641_s23, 1024, %s1643_s26, [#allocation5]  }
 0x7ae   :  { %2053 = dma.done.wait [#allocation5], 1024  }
 0x7af   :  { %2054 = vsyncadd [#allocation5], 4294966272 }
 0x7b0   :  { %1650 = vsyncpa [#allocation4], 1 }
 0x7b1   :  { %1651 = vsyncpa [#allocation7], 1 }
 0x7b2   :  { %1652 = vsyncpa [#allocation5], 1 }

</bundles_post_ra>
